<compile_context>
chip_gen: v7x
topology: tpu7x:2x2x1
jax: 0.10.0
libtpu: 0.0.40
codegen_flags: <defaults>
</compile_context>

<pallas_src>
import functools

import jax
import jax.numpy as jnp
from jax.experimental import pallas as pl
from jax.experimental.pallas import tpu as pltpu

LEAK = 0.1  # LeakyReLU negative slope


def _leaky(x):
    return jnp.where(x > 0, x, LEAK * x)


def _round_up(x, m):
    return ((x + m - 1) // m) * m


def _block_diag2(w):
    """2-block block-diagonal of an (r, c) matrix -> (2r, 2c)."""
    r, c = w.shape
    out = jnp.zeros((2 * r, 2 * c), w.dtype)
    out = out.at[:r, :c].set(w)
    out = out.at[r:, c:].set(w)
    return out


def _const_weight_spec(shape):
    """BlockSpec for a grid-invariant weight: constant index, single buffer."""
    zeros = (0,) * len(shape)
    return pl.BlockSpec(shape, lambda b, _z=zeros: _z,
                        pipeline_mode=pl.Buffered(1))


# ----------------------------------------------------------------------------
# Fused kernel. One grid step = P pairs of batch samples; each pair shares the
# 128 channel lanes (lane = sample_in_pair * 64 + channel).
# ----------------------------------------------------------------------------
def _da_conv_kernel(d_ref, x_ref, w1_ref, w2_ref, ca1_ref, ca2_ref,
                    wc_ref, bc_ref, out_ref, *, K):
    P, H, W, CC = out_ref.shape          # CC = 2*C = 128 packed lanes
    Wr = x_ref.shape[2]                  # right-padded, 8-aligned width
    p = (K - 1) // 2

    # ---- degradation-conditioned depthwise taps + channel attention (M=P) ----
    # NOTE: default dot precision (bf16 operands, f32 accum) matches the pure
    # JAX reference; pass precision=HIGHEST here for bit-closer PyTorch parity.
    d = d_ref[0]                                                    # (P, CC)
    h = _leaky(jnp.dot(d, w1_ref[...], preferred_element_type=jnp.float32))
    # w2 columns are pre-permuted (tap-major, lane = s*C + c) in the wrapper.
    dwk = jnp.dot(h, w2_ref[...], preferred_element_type=jnp.float32)   # (P, K*K*CC)
    a = _leaky(jnp.dot(d, ca1_ref[...], preferred_element_type=jnp.float32))
    att = jax.nn.sigmoid(
        jnp.dot(a, ca2_ref[...], preferred_element_type=jnp.float32))   # (P, CC)

    # ---- depthwise KxK conv -------------------------------------------------
    # x_ref already carries the conv zero padding: the feature map lives in
    # rows [p, p+H) and cols [0, W); all other rows/cols are zero.  W shifts
    # are XLU rolls (the circular wrap only ever pulls in pad zeros because
    # Wr >= W + 2p); H shifts are outer-dim slices (free).
    xp = x_ref[...].astype(jnp.float32)                             # (P, Hp, Wr, CC)
    acc = jnp.zeros((P, H, W, CC), jnp.float32)
    for dx in range(K):
        shift = (p - dx) % Wr
        xs = xp if shift == 0 else pltpu.roll(xp, shift=shift, axis=2)
        xs = xs[:, :, :W, :]                                        # offset-0 slice
        for dy in range(K):
            t = dy * K + dx
            tap = dwk[:, t * CC:(t + 1) * CC].reshape(P, 1, 1, CC)  # lane-aligned
            acc = acc + xs[:, dy:dy + H] * tap
    acc = _leaky(acc)

    # ---- 1x1 conv (block-diagonal weight keeps the packed samples apart) ----
    y = jnp.dot(acc.reshape(P * H * W, CC), wc_ref[...],
                preferred_element_type=jnp.float32)
    y = (y + bc_ref[...]).reshape(P, H, W, CC)

    # ---- channel-attention residual (channels_out == channels_in) -----------
    x_data = xp[:, p:p + H, :W, :]                                  # unpadded x
    y = y + x_data * att.reshape(P, 1, 1, CC)
    out_ref[...] = y.astype(out_ref.dtype)


# ----------------------------------------------------------------------------
# Wrapper: PyTorch-style NCHW in / NCHW out, static weight prep, pair packing.
# ----------------------------------------------------------------------------
def da_conv_forward(x_feat, deg, params, kernel_size=3):
    """x_feat: (B, C, H, W) f32 (NCHW); deg: (B, 64) f32. Returns (B, C, H, W)."""
    B, C, H, W = x_feat.shape
    K = kernel_size
    KK = K * K
    p = (K - 1) // 2
    Cout = params['conv_w'].shape[0]
    R = params['ca_w1'].shape[0]
    assert C == 64 and deg.shape[1] == 64, "DA_conv pins channels_in to 64"
    assert Cout == C, "residual `out + x*att` requires channels_out == channels_in"

    CC = 2 * C                    # packed channel lanes (=128)
    Hp = H + 2 * p                # symmetric H pad
    Wr = _round_up(W + 2 * p, 8)  # right-only W pad, 8-aligned sublanes

    # ---- pairs-per-step P from the VMEM budget; keep >=2 grid steps ---------
    try:
        vmem_cap = int(pltpu.get_tpu_info().vmem_capacity_bytes)
    except Exception:                        # conservative default (v7x per-core)
        vmem_cap = 64 * 1024 * 1024
    weight_bytes = 4 * (CC * CC + CC * KK * CC + CC * 2 * R + 2 * R * CC
                        + CC * CC + CC)
    per_pair = 4 * (5 * Hp * Wr + 5 * H * W) * CC      # io blocks + live temps
    budget = max(per_pair, int(0.55 * vmem_cap) - 2 * weight_bytes - (2 << 20))
    B2 = pl.cdiv(B, 2)
    P = max(1, min(budget // per_pair, B2))
    if B2 >= 2:
        P = max(1, min(P, pl.cdiv(B2, 2)))   # >=2 grid steps (v7x: 2 TensorCores)
    NB = pl.cdiv(B2, P)
    Bfull = 2 * P * NB
    B2full = P * NB

    if Bfull != B:
        x_feat = jnp.concatenate(
            [x_feat, jnp.zeros((Bfull - B,) + x_feat.shape[1:], x_feat.dtype)],
            axis=0)
        deg = jnp.concatenate(
            [deg, jnp.zeros((Bfull - B, deg.shape[1]), deg.dtype)], axis=0)

    # ---- static weight prep: transpose to (in,out), permute, block-diagonal --
    w1_io = params['k_w1'].T.astype(jnp.float32)                     # (64, 64)
    w2_io = params['k_w2'].T.astype(jnp.float32)                     # (64, C*KK), col=c*KK+t
    w2_tc = w2_io.reshape(64, C, KK).transpose(0, 2, 1)              # (64, KK, C)
    ca1_io = params['ca_w1'][:, :, 0, 0].T.astype(jnp.float32)       # (C, R)
    ca2_io = params['ca_w2'][:, :, 0, 0].T.astype(jnp.float32)       # (R, Cout)
    wconv_io = params['conv_w'][:, :, 0, 0].T.astype(jnp.float32)    # (C, Cout)

    W1bd = _block_diag2(w1_io)                                       # (CC, CC)
    W2bd = jnp.zeros((CC, KK, 2, C), jnp.float32)
    W2bd = W2bd.at[:C, :, 0, :].set(w2_tc).at[C:, :, 1, :].set(w2_tc)
    W2bd = W2bd.reshape(CC, KK * CC)                                 # cols: (t, s, c)
    CA1bd = _block_diag2(ca1_io)                                     # (CC, 2R)
    CA2bd = _block_diag2(ca2_io)                                     # (2R, CC)
    Wcbd = _block_diag2(wconv_io)                                    # (CC, CC)
    bcat = jnp.concatenate([params['conv_b'], params['conv_b']]
                           ).reshape(1, CC).astype(jnp.float32)

    # ---- pair-packed NHWC with the conv zero padding baked in ---------------
    x_pairs = x_feat.reshape(B2full, 2, C, H, W).transpose(0, 3, 4, 1, 2) \
                    .reshape(B2full, H, W, CC).astype(jnp.float32)
    x_pairs = jnp.pad(x_pairs, ((0, 0), (p, p), (0, Wr - W), (0, 0)))
    d_pairs = deg.astype(jnp.float32).reshape(NB, P, CC)

    # ---- VMEM limit derived from the actual footprint -----------------------
    need = (2 * 4 * P * Hp * Wr * CC                    # double-buffered inputs
            + 2 * 4 * P * H * W * CC                    # double-buffered outputs
            + 4 * P * (3 * Hp * Wr + 2 * H * W) * CC    # live temporaries
            + 2 * weight_bytes + (2 << 20))
    vmem_limit = int(min(max(need, 32 << 20), int(0.9 * vmem_cap)))

    kern = functools.partial(_da_conv_kernel, K=K)
    out_pairs = pl.pallas_call(
        kern,
        out_shape=jax.ShapeDtypeStruct((B2full, H, W, CC), jnp.float32),
        grid=(NB,),
        in_specs=[
            pl.BlockSpec((1, P, CC), lambda b: (b, 0, 0)),           # deg pairs
            pl.BlockSpec((P, Hp, Wr, CC), lambda b: (b, 0, 0, 0)),   # padded x pairs
            _const_weight_spec((CC, CC)),                            # W1 (block-diag)
            _const_weight_spec((CC, KK * CC)),                       # W2 (permuted)
            _const_weight_spec((CC, 2 * R)),                         # CA1
            _const_weight_spec((2 * R, CC)),                         # CA2
            _const_weight_spec((CC, CC)),                            # 1x1 conv W
            _const_weight_spec((1, CC)),                             # 1x1 conv bias
        ],
        out_specs=pl.BlockSpec((P, H, W, CC), lambda b: (b, 0, 0, 0)),
        compiler_params=pltpu.CompilerParams(
            dimension_semantics=("parallel",),
            vmem_limit_bytes=vmem_limit),
    )(d_pairs, x_pairs, W1bd, W2bd, CA1bd, CA2bd, Wcbd, bcat)

    out = out_pairs.reshape(B2full, H, W, 2, Cout).transpose(0, 3, 4, 1, 2) \
                   .reshape(Bfull, Cout, H, W)
    return out[:B]


# ----------------------------------------------------------------------------
# Pure-JAX reference (mirrors the PyTorch code exactly, NCHW) for sanity check.
# ----------------------------------------------------------------------------
def da_conv_reference(x_feat, deg, params, kernel_size=3):
    B, C, H, W = x_feat.shape
    K = kernel_size
    p = (K - 1) // 2
    h = _leaky(deg @ params['k_w1'].T)
    kern = (h @ params['k_w2'].T).reshape(B * C, 1, K, K)
    out = jax.lax.conv_general_dilated(
        x_feat.reshape(1, B * C, H, W), kern, (1, 1), [(p, p), (p, p)],
        dimension_numbers=('NCHW', 'OIHW', 'NCHW'), feature_group_count=B * C)
    out = _leaky(out).reshape(B, C, H, W)
    wconv = params['conv_w'][:, :, 0, 0]
    out = jnp.einsum('oc,bchw->bohw', wconv, out) \
        + params['conv_b'][None, :, None, None]
    ca_h = _leaky(jnp.einsum('oc,bc->bo', params['ca_w1'][:, :, 0, 0], deg))
    att = jax.nn.sigmoid(jnp.einsum('oc,bc->bo', params['ca_w2'][:, :, 0, 0], ca_h))
    return out + x_feat * att[:, :, None, None]


if __name__ == "__main__":
    # channels_in is pinned to 64 by the module (Linear(64, ...) consumes x[1]
    # and the generated kernels feed a groups=B*C depthwise conv), so C = 64.
    C = 64
    Cout = C
    K, reduction = 3, 8

    key = jax.random.PRNGKey(0)
    ks = jax.random.split(key, 10)
    scale = lambda fan_in: 1.0 / jnp.sqrt(fan_in)
    params = {
        'k_w1': jax.random.normal(ks[0], (64, 64), jnp.float32) * scale(64),
        'k_w2': jax.random.normal(ks[1], (64 * K * K, 64), jnp.float32) * scale(64),
        'conv_w': jax.random.normal(ks[2], (Cout, C, 1, 1), jnp.float32) * scale(C),
        'conv_b': jax.random.normal(ks[3], (Cout,), jnp.float32) * 0.1,
        'ca_w1': jax.random.normal(ks[4], (C // reduction, C, 1, 1), jnp.float32) * scale(C),
        'ca_w2': jax.random.normal(ks[5], (Cout, C // reduction, 1, 1), jnp.float32) * scale(C // reduction),
    }

    # Two configs: (B=2, 8x8) -> single pair / single step;
    #              (B=5, 16x16) -> odd batch, P=2 pairs/step, 2 parallel steps.
    for (B, H, W, kx, kd) in [(2, 8, 8, ks[6], ks[7]), (5, 16, 16, ks[8], ks[9])]:
        x0 = jax.random.normal(kx, (B, C, H, W), jnp.float32)   # feature map
        x1 = jax.random.normal(kd, (B, 64), jnp.float32)        # degradation rep

        out = jax.block_until_ready(da_conv_forward(x0, x1, params, kernel_size=K))
        assert out.shape == (B, Cout, H, W)

        ref = da_conv_reference(x0, x1, params, kernel_size=K)
        err = float(jnp.max(jnp.abs(out - ref)))
        assert jnp.allclose(out, ref, rtol=1e-2, atol=1e-2), \
            f"mismatch at B={B}, H={H}, W={W}: max abs err {err}"

    print("KERNEL_OK")
</pallas_src>

<mosaic_0001>
module attributes {stable_mosaic.version = 11 : i64} {
  func.func @_da_conv_kernel(%arg0: i32, %arg1: memref<1x1x128xf32, #tpu.memory_space<vmem>>, %arg2: memref<1x10x16x128xf32, #tpu.memory_space<vmem>>, %arg3: memref<128x128xf32, #tpu.memory_space<vmem>>, %arg4: memref<128x1152xf32, #tpu.memory_space<vmem>>, %arg5: memref<128x16xf32, #tpu.memory_space<vmem>>, %arg6: memref<16x128xf32, #tpu.memory_space<vmem>>, %arg7: memref<128x128xf32, #tpu.memory_space<vmem>>, %arg8: memref<1x128xf32, #tpu.memory_space<vmem>>, %arg9: memref<1x8x8x128xf32, #tpu.memory_space<vmem>>) attributes {dimension_semantics = [#tpu.dimension_semantics<parallel>], iteration_bounds = array<i64: 1>, scalar_prefetch = 0 : i64, scratch_operands = 0 : i64, tpu.core_type = #tpu.core_type<tc>, window_params = [{transform_indices = @transform_0, window_bounds = array<i64: 1, 1, 128>}, {transform_indices = @transform_1, window_bounds = array<i64: 1, 10, 16, 128>}, {pipeline_mode = #tpu.pipeline_mode<synchronous>, transform_indices = @transform_2, window_bounds = array<i64: 128, 128>}, {pipeline_mode = #tpu.pipeline_mode<synchronous>, transform_indices = @transform_3, window_bounds = array<i64: 128, 1152>}, {pipeline_mode = #tpu.pipeline_mode<synchronous>, transform_indices = @transform_4, window_bounds = array<i64: 128, 16>}, {pipeline_mode = #tpu.pipeline_mode<synchronous>, transform_indices = @transform_5, window_bounds = array<i64: 16, 128>}, {pipeline_mode = #tpu.pipeline_mode<synchronous>, transform_indices = @transform_6, window_bounds = array<i64: 128, 128>}, {pipeline_mode = #tpu.pipeline_mode<synchronous>, transform_indices = @transform_7, window_bounds = array<i64: 1, 128>}, {transform_indices = @transform_8, window_bounds = array<i64: 1, 8, 8, 128>}]} {
    %c0 = arith.constant 0 : index
    %c0_0 = arith.constant 0 : index
    %c0_1 = arith.constant 0 : index
    %0 = vector.load %arg1[%c0, %c0_0, %c0_1] : memref<1x1x128xf32, #tpu.memory_space<vmem>>, vector<1x1x128xf32>
    %1 = vector.shape_cast %0 : vector<1x1x128xf32> to vector<1x128xf32>
    %c0_2 = arith.constant 0 : index
    %c0_3 = arith.constant 0 : index
    %2 = vector.load %arg3[%c0_2, %c0_3] : memref<128x128xf32, #tpu.memory_space<vmem>>, vector<128x128xf32>
    %cst = arith.constant dense<0.000000e+00> : vector<1x128xf32>
    %3 = tpu.matmul %1, %2, %cst {dimension_numbers = #tpu.dot_dimension_numbers<[1], [0], [0], [1], [0, 0, 1, 1], [], []>} : vector<1x128xf32>, vector<128x128xf32>, vector<1x128xf32> -> vector<1x128xf32>
    %cst_4 = arith.constant 0.000000e+00 : f32
    %4 = vector.broadcast %cst_4 : f32 to vector<1x128xf32>
    %5 = arith.cmpf ogt, %3, %4 : vector<1x128xf32>
    %cst_5 = arith.constant 1.000000e-01 : f32
    %6 = vector.broadcast %cst_5 : f32 to vector<1x128xf32>
    %7 = arith.mulf %6, %3 : vector<1x128xf32>
    %8 = arith.select %5, %3, %7 : vector<1x128xi1>, vector<1x128xf32>
    %c0_6 = arith.constant 0 : index
    %c0_7 = arith.constant 0 : index
    %9 = vector.load %arg4[%c0_6, %c0_7] : memref<128x1152xf32, #tpu.memory_space<vmem>>, vector<128x1152xf32>
    %cst_8 = arith.constant dense<0.000000e+00> : vector<1x1152xf32>
    %10 = tpu.matmul %8, %9, %cst_8 {dimension_numbers = #tpu.dot_dimension_numbers<[1], [0], [0], [1], [0, 0, 1, 1], [], []>} : vector<1x128xf32>, vector<128x1152xf32>, vector<1x1152xf32> -> vector<1x1152xf32>
    %c0_9 = arith.constant 0 : index
    %c0_10 = arith.constant 0 : index
    %11 = vector.load %arg5[%c0_9, %c0_10] : memref<128x16xf32, #tpu.memory_space<vmem>>, vector<128x16xf32>
    %cst_11 = arith.constant dense<0.000000e+00> : vector<1x16xf32>
    %12 = tpu.matmul %1, %11, %cst_11 {dimension_numbers = #tpu.dot_dimension_numbers<[1], [0], [0], [1], [0, 0, 1, 1], [], []>} : vector<1x128xf32>, vector<128x16xf32>, vector<1x16xf32> -> vector<1x16xf32>
    %cst_12 = arith.constant 0.000000e+00 : f32
    %13 = vector.broadcast %cst_12 : f32 to vector<1x16xf32>
    %14 = arith.cmpf ogt, %12, %13 : vector<1x16xf32>
    %cst_13 = arith.constant 1.000000e-01 : f32
    %15 = vector.broadcast %cst_13 : f32 to vector<1x16xf32>
    %16 = arith.mulf %15, %12 : vector<1x16xf32>
    %17 = arith.select %14, %12, %16 : vector<1x16xi1>, vector<1x16xf32>
    %c0_14 = arith.constant 0 : index
    %c0_15 = arith.constant 0 : index
    %18 = vector.load %arg6[%c0_14, %c0_15] : memref<16x128xf32, #tpu.memory_space<vmem>>, vector<16x128xf32>
    %cst_16 = arith.constant dense<0.000000e+00> : vector<1x128xf32>
    %19 = tpu.matmul %17, %18, %cst_16 {dimension_numbers = #tpu.dot_dimension_numbers<[1], [0], [0], [1], [0, 0, 1, 1], [], []>} : vector<1x16xf32>, vector<16x128xf32>, vector<1x128xf32> -> vector<1x128xf32>
    %20 = arith.negf %19 : vector<1x128xf32>
    %21 = math.exp %20 : vector<1x128xf32>
    %cst_17 = arith.constant 1.000000e+00 : f32
    %22 = vector.broadcast %cst_17 : f32 to vector<1x128xf32>
    %23 = arith.addf %22, %21 : vector<1x128xf32>
    %24 = arith.divf %22, %23 : vector<1x128xf32>
    %c0_18 = arith.constant 0 : index
    %c0_19 = arith.constant 0 : index
    %c0_20 = arith.constant 0 : index
    %c0_21 = arith.constant 0 : index
    %25 = vector.load %arg2[%c0_18, %c0_19, %c0_20, %c0_21] : memref<1x10x16x128xf32, #tpu.memory_space<vmem>>, vector<1x10x16x128xf32>
    %cst_22 = arith.constant 0.000000e+00 : f32
    %26 = vector.broadcast %cst_22 : f32 to vector<1x8x8x128xf32>
    %c1_i32 = arith.constant 1 : i32
    %27 = tpu.dynamic_rotate %25 by %c1_i32 dim 2 : vector<1x10x16x128xf32>, i32 -> vector<1x10x16x128xf32>
    %28 = vector.extract_strided_slice %27 {offsets = [0, 0, 0, 0], sizes = [1, 10, 8, 128], strides = [1, 1, 1, 1]} : vector<1x10x16x128xf32> to vector<1x10x8x128xf32>
    %29 = vector.extract_strided_slice %10 {offsets = [0, 0], sizes = [1, 128], strides = [1, 1]} : vector<1x1152xf32> to vector<1x128xf32>
    %30 = vector.shape_cast %29 : vector<1x128xf32> to vector<1x1x1x128xf32>
    %31 = vector.extract_strided_slice %28 {offsets = [0, 0, 0, 0], sizes = [1, 8, 8, 128], strides = [1, 1, 1, 1]} : vector<1x10x8x128xf32> to vector<1x8x8x128xf32>
    %32 = vector.broadcast %30 : vector<1x1x1x128xf32> to vector<1x8x8x128xf32>
    %33 = arith.mulf %31, %32 : vector<1x8x8x128xf32>
    %34 = arith.addf %26, %33 : vector<1x8x8x128xf32>
    %35 = vector.extract_strided_slice %10 {offsets = [0, 384], sizes = [1, 128], strides = [1, 1]} : vector<1x1152xf32> to vector<1x128xf32>
    %36 = vector.shape_cast %35 : vector<1x128xf32> to vector<1x1x1x128xf32>
    %37 = vector.extract_strided_slice %28 {offsets = [0, 1, 0, 0], sizes = [1, 8, 8, 128], strides = [1, 1, 1, 1]} : vector<1x10x8x128xf32> to vector<1x8x8x128xf32>
    %38 = vector.broadcast %36 : vector<1x1x1x128xf32> to vector<1x8x8x128xf32>
    %39 = arith.mulf %37, %38 : vector<1x8x8x128xf32>
    %40 = arith.addf %34, %39 : vector<1x8x8x128xf32>
    %41 = vector.extract_strided_slice %10 {offsets = [0, 768], sizes = [1, 128], strides = [1, 1]} : vector<1x1152xf32> to vector<1x128xf32>
    %42 = vector.shape_cast %41 : vector<1x128xf32> to vector<1x1x1x128xf32>
    %43 = vector.extract_strided_slice %28 {offsets = [0, 2, 0, 0], sizes = [1, 8, 8, 128], strides = [1, 1, 1, 1]} : vector<1x10x8x128xf32> to vector<1x8x8x128xf32>
    %44 = vector.broadcast %42 : vector<1x1x1x128xf32> to vector<1x8x8x128xf32>
    %45 = arith.mulf %43, %44 : vector<1x8x8x128xf32>
    %46 = arith.addf %40, %45 : vector<1x8x8x128xf32>
    %47 = vector.extract_strided_slice %25 {offsets = [0, 0, 0, 0], sizes = [1, 10, 8, 128], strides = [1, 1, 1, 1]} : vector<1x10x16x128xf32> to vector<1x10x8x128xf32>
    %48 = vector.extract_strided_slice %10 {offsets = [0, 128], sizes = [1, 128], strides = [1, 1]} : vector<1x1152xf32> to vector<1x128xf32>
    %49 = vector.shape_cast %48 : vector<1x128xf32> to vector<1x1x1x128xf32>
    %50 = vector.extract_strided_slice %47 {offsets = [0, 0, 0, 0], sizes = [1, 8, 8, 128], strides = [1, 1, 1, 1]} : vector<1x10x8x128xf32> to vector<1x8x8x128xf32>
    %51 = vector.broadcast %49 : vector<1x1x1x128xf32> to vector<1x8x8x128xf32>
    %52 = arith.mulf %50, %51 : vector<1x8x8x128xf32>
    %53 = arith.addf %46, %52 : vector<1x8x8x128xf32>
    %54 = vector.extract_strided_slice %10 {offsets = [0, 512], sizes = [1, 128], strides = [1, 1]} : vector<1x1152xf32> to vector<1x128xf32>
    %55 = vector.shape_cast %54 : vector<1x128xf32> to vector<1x1x1x128xf32>
    %56 = vector.extract_strided_slice %47 {offsets = [0, 1, 0, 0], sizes = [1, 8, 8, 128], strides = [1, 1, 1, 1]} : vector<1x10x8x128xf32> to vector<1x8x8x128xf32>
    %57 = vector.broadcast %55 : vector<1x1x1x128xf32> to vector<1x8x8x128xf32>
    %58 = arith.mulf %56, %57 : vector<1x8x8x128xf32>
    %59 = arith.addf %53, %58 : vector<1x8x8x128xf32>
    %60 = vector.extract_strided_slice %10 {offsets = [0, 896], sizes = [1, 128], strides = [1, 1]} : vector<1x1152xf32> to vector<1x128xf32>
    %61 = vector.shape_cast %60 : vector<1x128xf32> to vector<1x1x1x128xf32>
    %62 = vector.extract_strided_slice %47 {offsets = [0, 2, 0, 0], sizes = [1, 8, 8, 128], strides = [1, 1, 1, 1]} : vector<1x10x8x128xf32> to vector<1x8x8x128xf32>
    %63 = vector.broadcast %61 : vector<1x1x1x128xf32> to vector<1x8x8x128xf32>
    %64 = arith.mulf %62, %63 : vector<1x8x8x128xf32>
    %65 = arith.addf %59, %64 : vector<1x8x8x128xf32>
    %c15_i32 = arith.constant 15 : i32
    %66 = tpu.dynamic_rotate %25 by %c15_i32 dim 2 : vector<1x10x16x128xf32>, i32 -> vector<1x10x16x128xf32>
    %67 = vector.extract_strided_slice %66 {offsets = [0, 0, 0, 0], sizes = [1, 10, 8, 128], strides = [1, 1, 1, 1]} : vector<1x10x16x128xf32> to vector<1x10x8x128xf32>
    %68 = vector.extract_strided_slice %10 {offsets = [0, 256], sizes = [1, 128], strides = [1, 1]} : vector<1x1152xf32> to vector<1x128xf32>
    %69 = vector.shape_cast %68 : vector<1x128xf32> to vector<1x1x1x128xf32>
    %70 = vector.extract_strided_slice %67 {offsets = [0, 0, 0, 0], sizes = [1, 8, 8, 128], strides = [1, 1, 1, 1]} : vector<1x10x8x128xf32> to vector<1x8x8x128xf32>
    %71 = vector.broadcast %69 : vector<1x1x1x128xf32> to vector<1x8x8x128xf32>
    %72 = arith.mulf %70, %71 : vector<1x8x8x128xf32>
    %73 = arith.addf %65, %72 : vector<1x8x8x128xf32>
    %74 = vector.extract_strided_slice %10 {offsets = [0, 640], sizes = [1, 128], strides = [1, 1]} : vector<1x1152xf32> to vector<1x128xf32>
    %75 = vector.shape_cast %74 : vector<1x128xf32> to vector<1x1x1x128xf32>
    %76 = vector.extract_strided_slice %67 {offsets = [0, 1, 0, 0], sizes = [1, 8, 8, 128], strides = [1, 1, 1, 1]} : vector<1x10x8x128xf32> to vector<1x8x8x128xf32>
    %77 = vector.broadcast %75 : vector<1x1x1x128xf32> to vector<1x8x8x128xf32>
    %78 = arith.mulf %76, %77 : vector<1x8x8x128xf32>
    %79 = arith.addf %73, %78 : vector<1x8x8x128xf32>
    %80 = vector.extract_strided_slice %10 {offsets = [0, 1024], sizes = [1, 128], strides = [1, 1]} : vector<1x1152xf32> to vector<1x128xf32>
    %81 = vector.shape_cast %80 : vector<1x128xf32> to vector<1x1x1x128xf32>
    %82 = vector.extract_strided_slice %67 {offsets = [0, 2, 0, 0], sizes = [1, 8, 8, 128], strides = [1, 1, 1, 1]} : vector<1x10x8x128xf32> to vector<1x8x8x128xf32>
    %83 = vector.broadcast %81 : vector<1x1x1x128xf32> to vector<1x8x8x128xf32>
    %84 = arith.mulf %82, %83 : vector<1x8x8x128xf32>
    %85 = arith.addf %79, %84 : vector<1x8x8x128xf32>
    %cst_23 = arith.constant 0.000000e+00 : f32
    %86 = vector.broadcast %cst_23 : f32 to vector<1x8x8x128xf32>
    %87 = arith.cmpf ogt, %85, %86 : vector<1x8x8x128xf32>
    %cst_24 = arith.constant 1.000000e-01 : f32
    %88 = vector.broadcast %cst_24 : f32 to vector<1x8x8x128xf32>
    %89 = arith.mulf %88, %85 : vector<1x8x8x128xf32>
    %90 = arith.select %87, %85, %89 : vector<1x8x8x128xi1>, vector<1x8x8x128xf32>
    %91 = vector.shape_cast %90 : vector<1x8x8x128xf32> to vector<64x128xf32>
    %c0_25 = arith.constant 0 : index
    %c0_26 = arith.constant 0 : index
    %92 = vector.load %arg7[%c0_25, %c0_26] : memref<128x128xf32, #tpu.memory_space<vmem>>, vector<128x128xf32>
    %cst_27 = arith.constant dense<0.000000e+00> : vector<64x128xf32>
    %93 = tpu.matmul %91, %92, %cst_27 {dimension_numbers = #tpu.dot_dimension_numbers<[1], [0], [0], [1], [0, 0, 1, 1], [], []>} : vector<64x128xf32>, vector<128x128xf32>, vector<64x128xf32> -> vector<64x128xf32>
    %c0_28 = arith.constant 0 : index
    %c0_29 = arith.constant 0 : index
    %94 = vector.load %arg8[%c0_28, %c0_29] : memref<1x128xf32, #tpu.memory_space<vmem>>, vector<1x128xf32>
    %95 = vector.broadcast %94 : vector<1x128xf32> to vector<64x128xf32>
    %96 = arith.addf %93, %95 : vector<64x128xf32>
    %97 = vector.shape_cast %96 : vector<64x128xf32> to vector<1x8x8x128xf32>
    %98 = vector.extract_strided_slice %25 {offsets = [0, 1, 0, 0], sizes = [1, 8, 8, 128], strides = [1, 1, 1, 1]} : vector<1x10x16x128xf32> to vector<1x8x8x128xf32>
    %99 = vector.shape_cast %24 : vector<1x128xf32> to vector<1x1x1x128xf32>
    %100 = vector.broadcast %99 : vector<1x1x1x128xf32> to vector<1x8x8x128xf32>
    %101 = arith.mulf %98, %100 : vector<1x8x8x128xf32>
    %102 = arith.addf %97, %101 : vector<1x8x8x128xf32>
    %c0_30 = arith.constant 0 : index
    %c0_31 = arith.constant 0 : index
    %c0_32 = arith.constant 0 : index
    %c0_33 = arith.constant 0 : index
    %103 = vector.load %arg9[%c0_30, %c0_31, %c0_32, %c0_33] : memref<1x8x8x128xf32, #tpu.memory_space<vmem>>, vector<1x8x8x128xf32>
    tpu.vector_store %arg9[%c0_30, %c0_31, %c0_32, %c0_33], %102 {strides = array<i32>} : memref<1x8x8x128xf32, #tpu.memory_space<vmem>>, vector<1x8x8x128xf32>,
    return
  }
  func.func @transform_0(%arg0: i32) -> (i32, i32, i32) {
    %c0_i32 = arith.constant 0 : i32
    %c0_i32_0 = arith.constant 0 : i32
    %c0_i32_1 = arith.constant 0 : i32
    return %arg0, %c0_i32, %c0_i32_0 : i32, i32, i32
  }
  func.func @transform_1(%arg0: i32) -> (i32, i32, i32, i32) {
    %c0_i32 = arith.constant 0 : i32
    %c0_i32_0 = arith.constant 0 : i32
    %c0_i32_1 = arith.constant 0 : i32
    %c0_i32_2 = arith.constant 0 : i32
    return %arg0, %c0_i32, %c0_i32_0, %c0_i32_1 : i32, i32, i32, i32
  }
  func.func @transform_2(%arg0: i32) -> (i32, i32) {
    %c0_i32 = arith.constant 0 : i32
    %c0_i32_0 = arith.constant 0 : i32
    %c0_i32_1 = arith.constant 0 : i32
    return %c0_i32, %c0_i32_0 : i32, i32
  }
  func.func @transform_3(%arg0: i32) -> (i32, i32) {
    %c0_i32 = arith.constant 0 : i32
    %c0_i32_0 = arith.constant 0 : i32
    %c0_i32_1 = arith.constant 0 : i32
    return %c0_i32, %c0_i32_0 : i32, i32
  }
  func.func @transform_4(%arg0: i32) -> (i32, i32) {
    %c0_i32 = arith.constant 0 : i32
    %c0_i32_0 = arith.constant 0 : i32
    %c0_i32_1 = arith.constant 0 : i32
    return %c0_i32, %c0_i32_0 : i32, i32
  }
  func.func @transform_5(%arg0: i32) -> (i32, i32) {
    %c0_i32 = arith.constant 0 : i32
    %c0_i32_0 = arith.constant 0 : i32
    %c0_i32_1 = arith.constant 0 : i32
    return %c0_i32, %c0_i32_0 : i32, i32
  }
  func.func @transform_6(%arg0: i32) -> (i32, i32) {
    %c0_i32 = arith.constant 0 : i32
    %c0_i32_0 = arith.constant 0 : i32
    %c0_i32_1 = arith.constant 0 : i32
    return %c0_i32, %c0_i32_0 : i32, i32
  }
  func.func @transform_7(%arg0: i32) -> (i32, i32) {
    %c0_i32 = arith.constant 0 : i32
    %c0_i32_0 = arith.constant 0 : i32
    %c0_i32_1 = arith.constant 0 : i32
    return %c0_i32, %c0_i32_0 : i32, i32
  }
  func.func @transform_8(%arg0: i32) -> (i32, i32, i32, i32) {
    %c0_i32 = arith.constant 0 : i32
    %c0_i32_0 = arith.constant 0 : i32
    %c0_i32_1 = arith.constant 0 : i32
    %c0_i32_2 = arith.constant 0 : i32
    return %arg0, %c0_i32, %c0_i32_0, %c0_i32_1 : i32, i32, i32, i32
  }
}

</mosaic_0001>

<bundles_post_ra>
// kernel: tpu_custom_call.1
= control target key start
LH: loop header
LB: loop body
LE: loop exit
PB: predicated region body
PF: predicated region fallthrough
CT: control target
= control target key end

     0   :  { %13 = vsyncpa [#allocation3], 0  ;;  %s2469_s0 = inlined_call_operand.vmem [shape: f32[1,1,128], index: 0, kind: input, shape index: {}]   ;;  %s2470_s1 = inlined_call_operand.hbm [shape: f32[1,10,16,128], index: 1, kind: input, shape index: {}]   ;;  %s2471_s2 = inlined_call_operand.vmem [shape: f32[128,128], index: 2, kind: input, shape index: {}]   ;;  %s2472_s3 = inlined_call_operand.hbm [shape: f32[128,1152], index: 3, kind: input, shape index: {}]   ;;  %s2473_s4 = inlined_call_operand.vmem [shape: f32[128,16], index: 4, kind: input, shape index: {}]   ;;  %s2474_s5 = inlined_call_operand.vmem [shape: f32[16,128], index: 5, kind: input, shape index: {}]   ;;  %s2475_s6 = inlined_call_operand.hbm [shape: f32[128,128], index: 6, kind: input, shape index: {}]   ;;  %s2476_s7 = inlined_call_operand.vmem [shape: f32[1,128], index: 7, kind: input, shape index: {}]   ;;  %s2477_s8 = inlined_call_operand.hbm [shape: f32[1,8,8,128], index: 8, kind: output, shape index: {}]  }
   0x1   :  { %14 = vsyncpa [#allocation6], 0 }
   0x2   :  { %15 = vsyncpa [#allocation4], 0  ;;  %s1873_s27 = smov [#allocation5]   ;;  %s1779_s9 = scalar_lea.hbm %s2472_s3, 18432 }
   0x3   :  { %s37_s28 = sshll.u32 %s1873_s27, 4  ;;  %p1780_p0 = scmp.ne.s32.totalorder %s2472_s3, %s1779_s9  ;;  %s38_s28 = int_to_ptr.vmem [resolvable:$true] %s37_s28 }
   0x4   :  { %p1783_p1 = scmp.lt.u32.totalorder %s1779_s9, %s2472_s3 }
   0x6   :  { %p1785_p2 = pnand %p1783_p1, %p1780_p0 }
   0x8   :  { %1788 = shalt.err (!%p1785_p2)
}
   0x9   :  { %s1789_s14 = scalar_lea.vmem %s38_s28, 18432  ;;  %p1794_p4 = scmp.lt.s32.totalorder %s38_s28, %s38_s28 }
   0xa   :  { %p1790_p3 = scmp.ne.s32.totalorder %s38_s28, %s1789_s14  ;;  %p1795_p5 = scmp.lt.s32.totalorder %s1789_s14, %s1789_s14 }
   0xc   :  { %p1796_p6 = por %p1795_p5, %p1794_p4 }
   0xe   :  { %p1797_p7 = pnand %p1796_p6, %p1790_p3 }
  0x10   :  { %1800 = shalt.err (!%p1797_p7)
}
  0x11   :  { %s1874_s15 = smov 1152   ;;  %s1875_s16 = smov 72  }
  0x12   :  { %43 = dma.hbm_to_vmem [thread:$0]  %s2472_s3, 18432, %s38_s28, [#allocation6], %s1874_s15, %s1874_s15, %s1875_s16  }
  0x13   :  { %s1876_s19 = smov [#allocation2]   ;;  %s1801_s23 = scalar_lea.hbm %s2470_s1, 2560 }
  0x14   :  { %s23_s20 = sshll.u32 %s1876_s19, 4  ;;  %p1802_p8 = scmp.ne.s32.totalorder %s2470_s1, %s1801_s23  ;;  %s24_s20 = int_to_ptr.vmem [resolvable:$true] %s23_s20 }
  0x15   :  { %p1805_p9 = scmp.lt.u32.totalorder %s1801_s23, %s2470_s1 }
  0x17   :  { %p1807_p10 = pnand %p1805_p9, %p1802_p8 }
  0x19   :  { %1810 = shalt.err (!%p1807_p10)
}
  0x1a   :  { %s1811_s29 = scalar_lea.vmem %s24_s20, 2560  ;;  %p1816_p12 = scmp.lt.s32.totalorder %s24_s20, %s24_s20 }
  0x1b   :  { %p1812_p11 = scmp.ne.s32.totalorder %s24_s20, %s1811_s29  ;;  %p1817_p13 = scmp.lt.s32.totalorder %s1811_s29, %s1811_s29 }
  0x1d   :  { %p1818_p0 = por %p1817_p13, %p1816_p12 }
  0x1f   :  { %p1819_p1 = pnand %p1818_p0, %p1812_p11 }
  0x21   :  { %1822 = shalt.err (!%p1819_p1)
}
  0x22   :  { %s1877_s3 = smov 128   ;;  %s1878_s28 = smov 8  }
  0x23   :  { %29 = dma.hbm_to_vmem [thread:$0]  %s2470_s1, 2560, %s24_s20, [#allocation3], %s1877_s3, %s1877_s3, %s1878_s28  }
  0x24   :  { %s1879_s10 = smov [#allocation7]   ;;  %s1823_s14 = scalar_lea.hbm %s2475_s6, 2048 }
  0x25   :  { %s53_s11 = sshll.u32 %s1879_s10, 4  ;;  %p1824_p2 = scmp.ne.s32.totalorder %s2475_s6, %s1823_s14  ;;  %s54_s11 = int_to_ptr.vmem [resolvable:$true] %s53_s11 }
  0x26   :  { %p1827_p3 = scmp.lt.u32.totalorder %s1823_s14, %s2475_s6 }
  0x28   :  { %p1829_p4 = pnand %p1827_p3, %p1824_p2 }
  0x2a   :  { %1832 = shalt.err (!%p1829_p4)
}
  0x2b   :  { %s1833_s19 = scalar_lea.vmem %s54_s11, 2048  ;;  %p1838_p6 = scmp.lt.s32.totalorder %s54_s11, %s54_s11 }
  0x2c   :  { %p1834_p5 = scmp.ne.s32.totalorder %s54_s11, %s1833_s19  ;;  %p1839_p7 = scmp.lt.s32.totalorder %s1833_s19, %s1833_s19 }
  0x2e   :  { %p1840_p8 = por %p1839_p7, %p1838_p6 }
  0x30   :  { %p1841_p9 = pnand %p1840_p8, %p1834_p5 }
  0x32   :  { %1844 = shalt.err (!%p1841_p9)
}
  0x33   :  { %59 = dma.hbm_to_vmem [thread:$0]  %s2475_s6, 2048, %s54_s11, [#allocation6], %s1877_s3, %s1877_s3, %s1878_s28  }
  0x34   :  { %1867 = dma.done.wait [#allocation3], 2560  }
  0x35   :  { %1868 = vsyncadd [#allocation3], 4294964736 }
  0x36   :  { %1869 = dma.done.wait [#allocation6], 20480  }
  0x37   :  { %1870 = vsyncadd [#allocation6], 4294946816  ;;  %v1880_v0 = vmov 0.0|0.0   ;;  %vm1881_vm0 = vmmov 0   ;;  %v1882_v1 = vmov 0.0   ;;  %v72_v2 = vld [vmem:[%s2471_s2] sm:$0xff] }
  0x38   :  { %1529 = vmatprep.subr.bf16.mxu0 %v1880_v0  ;;  %1405 = vmatprep.mubr.msk.f32.mxu0 %vm1881_vm0, %v1882_v1  ;;  %v73_v3 = vld [vmem:[%s2471_s2 + $0x8] sm:$0xff]  ;;  %v74_v4 = vld [vmem:[%s2471_s2 + $0x10] sm:$0xff]  ;;  %v75_v6 = vld [vmem:[%s2471_s2 + $0x18] sm:$0xff]  ;;  %vm750_vm5 = vcmask 130048  }
  0x39   :  { %369 = vmatprep.mubr.f32.mxu1 %v1882_v1  ;;  %v1530_v5 = vpack.c.bf16 %v73_v3, %v72_v2  ;;  %v1533_v7 = vpack.c.bf16 %v75_v6, %v74_v4  ;;  %v76_v8 = vld [vmem:[%s2471_s2 + $0x20] sm:$0xff]  ;;  %v77_v9 = vld [vmem:[%s2471_s2 + $0x28] sm:$0xff]  ;;  %v171_v11 = vld [vmem:[#allocation5 + $0x50] sm:$0xff] }
  0x3a   :  { %v162_v10 = vld [vmem:[#allocation5 + $0x8] sm:$0xff]  ;;  %v1536_v12 = vpack.c.bf16 %v77_v9, %v76_v8  ;;  %v78_v13 = vld [vmem:[%s2471_s2 + $0x30] sm:$0xff]  ;;  %v161_v15 = vld [vmem:[#allocation5] sm:$0xff] }
  0x3b   :  { %1531 = vmatpush3.bf16.msra.mxu0 %v1530_v5  ;;  %v1553_v14 = vpack.c.bf16 %v171_v11, %v162_v10  ;;  %v170_v16 = vld [vmem:[#allocation5 + $0x48] sm:$0xff]  ;;  %v79_v17 = vld [vmem:[%s2471_s2 + $0x38] sm:$0xff]  ;;  %v189_v20 = vld [vmem:[#allocation5 + $0xe0] sm:$0xff] }
  0x3c   :  { %1532 = vmatprep.subr.bf16.mxu0 %v1880_v0  ;;  %v1555_v18 = vpack.c.bf16 %v170_v16, %v161_v15  ;;  %v180_v19 = vld [vmem:[#allocation5 + $0x98] sm:$0xff]  ;;  %v179_v22 = vld [vmem:[#allocation5 + $0x90] sm:$0xff]  ;;  %v1539_v24 = vpack.c.bf16 %v79_v17, %v78_v13  ;;  %v80_v25 = vld [vmem:[%s2471_s2 + $0x40] sm:$0xff] }
  0x3d   :  { %1554 = vmatprep.subr.bf16.mxu1 %v1553_v14  ;;  %v1557_v21 = vpack.c.bf16 %v189_v20, %v180_v19  ;;  %v188_v23 = vld [vmem:[#allocation5 + $0xd8] sm:$0xff]  ;;  %v198_v27 = vld [vmem:[#allocation5 + $0x128] sm:$0xff]  ;;  %v207_v28 = vld [vmem:[#allocation5 + $0x170] sm:$0xff] }
  0x3e   :  { %1556 = vmatpush1.bf16.msra.mxu1 %v1555_v18  ;;  %v1559_v26 = vpack.c.bf16 %v188_v23, %v179_v22  ;;  %v81_v29 = vld [vmem:[%s2471_s2 + $0x48] sm:$0xff]  ;;  %v1561_v30 = vpack.c.bf16 %v207_v28, %v198_v27  ;;  %v197_v31 = vld [vmem:[#allocation5 + $0x120] sm:$0xff]  ;;  %v216_v33 = vld [vmem:[#allocation5 + $0x1b8] sm:$0xff] }
  0x3f   :  { %1534 = vmatpush3.bf16.msra.mxu0 %v1533_v7  ;;  %1558 = vmatprep.subr.bf16.mxu1 %v1557_v21  ;;  %v206_v32 = vld [vmem:[#allocation5 + $0x168] sm:$0xff]  ;;  %v225_v35 = vld [vmem:[#allocation5 + $0x200] sm:$0xff]  ;;  %v1542_v36 = vpack.c.bf16 %v81_v29, %v80_v25  ;;  %v82_v37 = vld [vmem:[%s2471_s2 + $0x50] sm:$0xff] }
  0x40   :  { %1535 = vmatprep.subr.bf16.mxu0 %v1880_v0  ;;  %v1563_v34 = vpack.c.bf16 %v206_v32, %v197_v31  ;;  %v1565_v38 = vpack.c.bf16 %v225_v35, %v216_v33  ;;  %v215_v39 = vld [vmem:[#allocation5 + $0x1b0] sm:$0xff]  ;;  %v224_v40 = vld [vmem:[#allocation5 + $0x1f8] sm:$0xff]  ;;  %v234_v42 = vld [vmem:[#allocation5 + $0x248] sm:$0xff] }
  0x41   :  { %v83_v41 = vld [vmem:[%s2471_s2 + $0x58] sm:$0xff]  ;;  %v243_v43 = vld [vmem:[#allocation5 + $0x290] sm:$0xff]  ;;  %v1567_v44 = vpack.c.bf16 %v224_v40, %v215_v39  ;;  %v84_v46 = vld [vmem:[%s2471_s2 + $0x60] sm:$0xff] }
  0x42   :  { %1560 = vmatpush1.bf16.msra.mxu1 %v1559_v26  ;;  %v1545_v45 = vpack.c.bf16 %v83_v41, %v82_v37  ;;  %v1569_v47 = vpack.c.bf16 %v243_v43, %v234_v42  ;;  %v233_v48 = vld [vmem:[#allocation5 + $0x240] sm:$0xff]  ;;  %v242_v49 = vld [vmem:[#allocation5 + $0x288] sm:$0xff]  ;;  %v252_v51 = vld [vmem:[#allocation5 + $0x2d8] sm:$0xff] }
  0x43   :  { %1537 = vmatpush3.bf16.msra.mxu0 %v1536_v12  ;;  %1562 = vmatprep.subr.bf16.mxu1 %v1561_v30  ;;  %v85_v50 = vld [vmem:[%s2471_s2 + $0x68] sm:$0xff]  ;;  %v261_v52 = vld [vmem:[#allocation5 + $0x320] sm:$0xff]  ;;  %v1571_v53 = vpack.c.bf16 %v242_v49, %v233_v48  ;;  %v86_v55 = vld [vmem:[%s2471_s2 + $0x70] sm:$0xff] }
  0x44   :  { %1538 = vmatprep.subr.bf16.mxu0 %v1880_v0  ;;  %v1548_v54 = vpack.c.bf16 %v85_v50, %v84_v46  ;;  %v1573_v56 = vpack.c.bf16 %v261_v52, %v252_v51  ;;  %v251_v57 = vld [vmem:[#allocation5 + $0x2d0] sm:$0xff]  ;;  %v260_v58 = vld [vmem:[#allocation5 + $0x318] sm:$0xff]  ;;  %v270_v60 = vld [vmem:[#allocation5 + $0x368] sm:$0xff] }
  0x45   :  { %v87_v59 = vld [vmem:[%s2471_s2 + $0x78] sm:$0xff]  ;;  %v279_v61 = vld [vmem:[#allocation5 + $0x3b0] sm:$0xff]  ;;  %v173_v63 = vld [vmem:[#allocation5 + $0x60] sm:$0xff]  ;;  %v1575_v2 = vpack.c.bf16 %v260_v58, %v251_v57 }
  0x46   :  { %1564 = vmatpush1.bf16.msra.mxu1 %v1563_v34  ;;  %v164_v62 = vld [vmem:[#allocation5 + $0x18] sm:$0xff]  ;;  %v1551_v3 = vpack.c.bf16 %v87_v59, %v86_v55  ;;  %v163_v4 = vld [vmem:[#allocation5 + $0x10] sm:$0xff]  ;;  %v1577_v5 = vpack.c.bf16 %v279_v61, %v270_v60  ;;  %v269_v6 = vld [vmem:[#allocation5 + $0x360] sm:$0xff] }
  0x47   :  { %1540 = vmatpush3.bf16.msra.mxu0 %v1539_v24  ;;  %1566 = vmatprep.subr.bf16.mxu1 %v1565_v38  ;;  %v278_v7 = vld [vmem:[#allocation5 + $0x3a8] sm:$0xff]  ;;  %v1585_v8 = vpack.c.bf16 %v173_v63, %v164_v62  ;;  %v172_v9 = vld [vmem:[#allocation5 + $0x58] sm:$0xff]  ;;  %v297_v11 = vld [vmem:[#allocation5 + $0x440] sm:$0xff] }
  0x48   :  { %1541 = vmatprep.subr.bf16.mxu0 %v1880_v0  ;;  %v288_v10 = vld [vmem:[#allocation5 + $0x3f8] sm:$0xff]  ;;  %v182_v12 = vld [vmem:[#allocation5 + $0xa8] sm:$0xff]  ;;  %v191_v13 = vld [vmem:[#allocation5 + $0xf0] sm:$0xff]  ;;  %v1579_v14 = vpack.c.bf16 %v278_v7, %v269_v6  ;;  %v1587_v16 = vpack.c.bf16 %v172_v9, %v163_v4 }
  0x49   :  { %v2033_v15 = vld [vmem:[%s2469_s0] sm:$0x1]  ;;  %v1581_v17 = vpack.c.bf16 %v297_v11, %v288_v10  ;;  %v1589_v18 = vpack.c.bf16 %v191_v13, %v182_v12  ;;  %v190_v20 = vld [vmem:[#allocation5 + $0xe8] sm:$0xff]  ;;  %v200_v21 = vld [vmem:[#allocation5 + $0x138] sm:$0xff] }
  0x4a   :  { %1568 = vmatpush1.bf16.msra.mxu1 %v1567_v44  ;;  %v181_v19 = vld [vmem:[#allocation5 + $0xa0] sm:$0xff]  ;;  %v199_v25 = vld [vmem:[#allocation5 + $0x130] sm:$0xff]  ;;  %v208_v26 = vld [vmem:[#allocation5 + $0x178] sm:$0xff] }
  0x4b   :  { %1543 = vmatpush3.bf16.msra.mxu0 %v1542_v36  ;;  %1570 = vmatprep.subr.bf16.mxu1 %v1569_v47  ;;  %v209_v22 = vld [vmem:[#allocation5 + $0x180] sm:$0xff]  ;;  %v1591_v23 = vpack.c.bf16 %v190_v20, %v181_v19  ;;  %v218_v27 = vld [vmem:[#allocation5 + $0x1c8] sm:$0xff]  ;;  %v227_v28 = vld [vmem:[#allocation5 + $0x210] sm:$0xff]  ;;  %v1595_v29 = vpack.c.bf16 %v208_v26, %v199_v25 }
  0x4c   :  { %1544 = vmatprep.subr.bf16.mxu0 %v1880_v0  ;;  %v1593_v24 = vpack.c.bf16 %v209_v22, %v200_v21  ;;  %v1597_v30 = vpack.c.bf16 %v227_v28, %v218_v27  ;;  %v217_v31 = vld [vmem:[#allocation5 + $0x1c0] sm:$0xff]  ;;  %v226_v32 = vld [vmem:[#allocation5 + $0x208] sm:$0xff]  ;;  %v236_v33 = vld [vmem:[#allocation5 + $0x258] sm:$0xff] }
  0x4d   :  { %v245_v34 = vld [vmem:[#allocation5 + $0x2a0] sm:$0xff]  ;;  %v1599_v35 = vpack.c.bf16 %v226_v32, %v217_v31  ;;  %v235_v37 = vld [vmem:[#allocation5 + $0x250] sm:$0xff]  ;;  %v244_v38 = vld [vmem:[#allocation5 + $0x298] sm:$0xff] }
  0x4e   :  { %1572 = vmatpush1.bf16.msra.mxu1 %v1571_v53  ;;  %v1601_v36 = vpack.c.bf16 %v245_v34, %v236_v33  ;;  %v254_v39 = vld [vmem:[#allocation5 + $0x2e8] sm:$0xff]  ;;  %v263_v40 = vld [vmem:[#allocation5 + $0x330] sm:$0xff]  ;;  %v1603_v41 = vpack.c.bf16 %v244_v38, %v235_v37  ;;  %v253_v43 = vld [vmem:[#allocation5 + $0x2e0] sm:$0xff] }
  0x4f   :  { %1546 = vmatpush3.bf16.msra.mxu0 %v1545_v45  ;;  %1574 = vmatprep.subr.bf16.mxu1 %v1573_v56  ;;  %v1605_v42 = vpack.c.bf16 %v263_v40, %v254_v39  ;;  %v262_v44 = vld [vmem:[#allocation5 + $0x328] sm:$0xff]  ;;  %v272_v45 = vld [vmem:[#allocation5 + $0x378] sm:$0xff]  ;;  %v281_v46 = vld [vmem:[#allocation5 + $0x3c0] sm:$0xff] }
  0x50   :  { %1547 = vmatprep.subr.bf16.mxu0 %v1880_v0  ;;  %v1607_v47 = vpack.c.bf16 %v262_v44, %v253_v43  ;;  %v1609_v48 = vpack.c.bf16 %v281_v46, %v272_v45  ;;  %v271_v49 = vld [vmem:[#allocation5 + $0x370] sm:$0xff]  ;;  %v280_v50 = vld [vmem:[#allocation5 + $0x3b8] sm:$0xff]  ;;  %v290_v51 = vld [vmem:[#allocation5 + $0x408] sm:$0xff] }
  0x51   :  { %v299_v52 = vld [vmem:[#allocation5 + $0x450] sm:$0xff]  ;;  %v1611_v53 = vpack.c.bf16 %v280_v50, %v271_v49  ;;  %v296_v56 = vld [vmem:[#allocation5 + $0x438] sm:$0xff]  ;;  %v289_v57 = vld [vmem:[#allocation5 + $0x400] sm:$0xff] }
  0x52   :  { %1576 = vmatpush1.bf16.msra.mxu1 %v1575_v2  ;;  %v287_v55 = vld [vmem:[#allocation5 + $0x3f0] sm:$0xff]  ;;  %v298_v59 = vld [vmem:[#allocation5 + $0x448] sm:$0xff]  ;;  %v168_v63 = vld [vmem:[#allocation5 + $0x38] sm:$0xff] }
  0x53   :  { %1549 = vmatpush3.bf16.msra.mxu0 %v1548_v54  ;;  %1578 = vmatprep.subr.bf16.mxu1 %v1577_v5  ;;  %v1613_v54 = vpack.c.bf16 %v299_v52, %v290_v51  ;;  %v1583_v58 = vpack.c.bf16 %v296_v56, %v287_v55  ;;  %v1615_v60 = vpack.c.bf16 %v298_v59, %v289_v57  ;;  %v166_v61 = vld [vmem:[#allocation5 + $0x28] sm:$0xff]  ;;  %v175_v62 = vld [vmem:[#allocation5 + $0x70] sm:$0xff]  ;;  %v165_v5 = vld [vmem:[#allocation5 + $0x20] sm:$0xff] }
  0x54   :  { %1550 = vmatprep.subr.bf16.mxu0 %v1880_v0  ;;  %v1617_v2 = vpack.c.bf16 %v175_v62, %v166_v61  ;;  %v174_v6 = vld [vmem:[#allocation5 + $0x68] sm:$0xff]  ;;  %v167_v7 = vld [vmem:[#allocation5 + $0x30] sm:$0xff]  ;;  %v184_v9 = vld [vmem:[#allocation5 + $0xb8] sm:$0xff] }
  0x55   :  { %v193_v10 = vld [vmem:[#allocation5 + $0x100] sm:$0xff]  ;;  %v186_v11 = vld [vmem:[#allocation5 + $0xc8] sm:$0xff]  ;;  %v195_v12 = vld [vmem:[#allocation5 + $0x110] sm:$0xff] }
  0x56   :  { %1580 = vmatpush1.bf16.msra.mxu1 %v1579_v14  ;;  %v183_v19 = vld [vmem:[#allocation5 + $0xb0] sm:$0xff]  ;;  %v192_v20 = vld [vmem:[#allocation5 + $0xf8] sm:$0xff]  ;;  %v1621_v21 = vpack.c.bf16 %v193_v10, %v184_v9  ;;  %v1653_v22 = vpack.c.bf16 %v195_v12, %v186_v11  ;;  %v202_v25 = vld [vmem:[#allocation5 + $0x148] sm:$0xff] }
  0x57   :  { %1552 = vmatpush3.bf16.msra.mxu0 %v1551_v3  ;;  %1582 = vmatprep.subr.bf16.mxu1 %v1581_v17  ;;  %v177_v3 = vld [vmem:[#allocation5 + $0x80] sm:$0xff]  ;;  %v1619_v17 = vpack.c.bf16 %v174_v6, %v165_v5  ;;  %v211_v27 = vld [vmem:[#allocation5 + $0x190] sm:$0xff]  ;;  %v204_v28 = vld [vmem:[#allocation5 + $0x158] sm:$0xff] }
  0x58   :  { %1586 = vmatprep.subr.bf16.mxu0 %v1585_v8  ;;  %v1649_v4 = vpack.c.bf16 %v177_v3, %v168_v63  ;;  %v176_v8 = vld [vmem:[#allocation5 + $0x78] sm:$0xff]  ;;  %v201_v32 = vld [vmem:[#allocation5 + $0x140] sm:$0xff]  ;;  %v210_v33 = vld [vmem:[#allocation5 + $0x188] sm:$0xff]  ;;  %v1625_v34 = vpack.c.bf16 %v211_v27, %v202_v25 }
  0x59   :  { %v212_v37 = vld [vmem:[#allocation5 + $0x198] sm:$0xff]  ;;  %v229_v39 = vld [vmem:[#allocation5 + $0x220] sm:$0xff]  ;;  %v222_v40 = vld [vmem:[#allocation5 + $0x1e8] sm:$0xff] }
  0x5a   :  { %1406 = vmatmul.mubr.f32.vlgmr.msra.gmra.mrb[0].mxu0 %v2033_v15  ;;  %1584 = vmatpush1.bf16.msra.mxu1 %v1583_v58  ;;  %v220_v38 = vld [vmem:[#allocation5 + $0x1d8] sm:$0xff]  ;;  %v219_v44 = vld [vmem:[#allocation5 + $0x1d0] sm:$0xff]  ;;  %v230_v49 = vld [vmem:[#allocation5 + $0x228] sm:$0xff] }
  0x5b   :  { %1588 = vmatpush1.bf16.msra.mxu0 %v1587_v16  ;;  %440 = vmatprep.mubr.f32.mxu0 %v1882_v1  ;;  %v228_v45 = vld [vmem:[#allocation5 + $0x218] sm:$0xff]  ;;  %v1629_v46 = vpack.c.bf16 %v229_v39, %v220_v38  ;;  %v238_v50 = vld [vmem:[#allocation5 + $0x268] sm:$0xff]  ;;  %v247_v51 = vld [vmem:[#allocation5 + $0x2b0] sm:$0xff] }
  0x5c   :  { %1590 = vmatprep.subr.bf16.mxu0 %v1589_v18  ;;  %1618 = vmatprep.subr.bf16.mxu1 %v1617_v2  ;;  %v1651_v18 = vpack.c.bf16 %v176_v8, %v167_v7  ;;  %v240_v52 = vld [vmem:[#allocation5 + $0x278] sm:$0xff]  ;;  %v237_v56 = vld [vmem:[#allocation5 + $0x260] sm:$0xff]  ;;  %v246_v57 = vld [vmem:[#allocation5 + $0x2a8] sm:$0xff]  ;;  %v1633_v58 = vpack.c.bf16 %v247_v51, %v238_v50 }
  0x5d   :  { %v248_v61 = vld [vmem:[#allocation5 + $0x2b8] sm:$0xff]  ;;  %v265_v63 = vld [vmem:[#allocation5 + $0x340] sm:$0xff]  ;;  %v258_v2 = vld [vmem:[#allocation5 + $0x308] sm:$0xff] }
  0x5e   :  { %v256_v62 = vld [vmem:[#allocation5 + $0x2f8] sm:$0xff]  ;;  %v267_v3 = vld [vmem:[#allocation5 + $0x350] sm:$0xff]  ;;  %v257_v10 = vld [vmem:[#allocation5 + $0x300] sm:$0xff] }
  0x5f   :  { %1592 = vmatpush1.bf16.msra.mxu0 %v1591_v23  ;;  %v185_v23 = vld [vmem:[#allocation5 + $0xc0] sm:$0xff]  ;;  %v255_v6 = vld [vmem:[#allocation5 + $0x2f0] sm:$0xff]  ;;  %v264_v7 = vld [vmem:[#allocation5 + $0x338] sm:$0xff]  ;;  %v1637_v8 = vpack.c.bf16 %v265_v63, %v256_v62  ;;  %v1669_v9 = vpack.c.bf16 %v267_v3, %v258_v2 }
  0x60   :  { %1594 = vmatprep.subr.bf16.mxu0 %v1593_v24  ;;  %v194_v24 = vld [vmem:[#allocation5 + $0x108] sm:$0xff]  ;;  %v292_v25 = vld [vmem:[#allocation5 + $0x418] sm:$0xff]  ;;  %v301_v27 = vld [vmem:[#allocation5 + $0x460] sm:$0xff] }
  0x61   :  { %v1655_v31 = vpack.c.bf16 %v194_v24, %v185_v23  ;;  %v266_v11 = vld [vmem:[#allocation5 + $0x348] sm:$0xff]  ;;  %v275_v23 = vld [vmem:[#allocation5 + $0x390] sm:$0xff]  ;;  %v284_v24 = vld [vmem:[#allocation5 + $0x3d8] sm:$0xff] }
  0x62   :  { %v274_v12 = vld [vmem:[#allocation5 + $0x388] sm:$0xff]  ;;  %v241_v2 = vld [vmem:[#allocation5 + $0x280] sm:$0xff] }
  0x63   :  { %1596 = vmatpush1.bf16.msra.mxu0 %v1595_v29  ;;  %v213_v29 = vld [vmem:[#allocation5 + $0x1a0] sm:$0xff]  ;;  %v250_v3 = vld [vmem:[#allocation5 + $0x2c8] sm:$0xff] }
  0x64   :  { %1598 = vmatprep.subr.bf16.mxu0 %v1597_v30  ;;  %v1623_v30 = vpack.c.bf16 %v192_v20, %v183_v19  ;;  %v273_v19 = vld [vmem:[#allocation5 + $0x380] sm:$0xff]  ;;  %v282_v20 = vld [vmem:[#allocation5 + $0x3c8] sm:$0xff] }
  0x67   :  { %1600 = vmatpush1.bf16.msra.mxu0 %v1599_v35  ;;  %v1657_v35 = vpack.c.bf16 %v213_v29, %v204_v28  ;;  %v294_v28 = vld [vmem:[#allocation5 + $0x428] sm:$0xff]  ;;  %v303_v29 = vld [vmem:[#allocation5 + $0x470] sm:$0xff] }
  0x68   :  { %1602 = vmatprep.subr.bf16.mxu0 %v1601_v36  ;;  %v203_v36 = vld [vmem:[#allocation5 + $0x150] sm:$0xff] }
  0x69   :  { %v1659_v43 = vpack.c.bf16 %v212_v37, %v203_v36  ;;  %v293_v36 = vld [vmem:[#allocation5 + $0x420] sm:$0xff]  ;;  %v302_v37 = vld [vmem:[#allocation5 + $0x468] sm:$0xff] }
  0x6a   :  { %v1679_v39 = vpack.c.bf16 %v302_v37, %v293_v36  ;;  %v1125_v37 = vld [vmem:[#allocation7 + $0x38] sm:$0xff] }
  0x6b   :  { %1604 = vmatpush1.bf16.msra.mxu0 %v1603_v41  ;;  %v231_v41 = vld [vmem:[#allocation5 + $0x230] sm:$0xff] }
  0x6c   :  { %1606 = vmatprep.subr.bf16.mxu0 %v1605_v42  ;;  %v1627_v42 = vpack.c.bf16 %v210_v33, %v201_v32  ;;  %v291_v32 = vld [vmem:[#allocation5 + $0x410] sm:$0xff]  ;;  %v1645_v33 = vpack.c.bf16 %v301_v27, %v292_v25 }
  0x6f   :  { %1608 = vmatpush1.bf16.msra.mxu0 %v1607_v47  ;;  %v1661_v47 = vpack.c.bf16 %v231_v41, %v222_v40  ;;  %v169_v40 = vld [vmem:[#allocation5 + $0x40] sm:$0xff]  ;;  %v178_v41 = vld [vmem:[#allocation5 + $0x88] sm:$0xff] }
  0x70   :  { %1610 = vmatprep.subr.bf16.mxu0 %v1609_v48  ;;  %v221_v48 = vld [vmem:[#allocation5 + $0x1e0] sm:$0xff] }
  0x71   :  { %v1663_v55 = vpack.c.bf16 %v230_v49, %v221_v48  ;;  %v661_v48 = vld [vmem:[%s2473_s4 + $0x10] sm:$0xff]  ;;  %v662_v49 = vld [vmem:[%s2473_s4 + $0x18] sm:$0xff] }
  0x72   :  { %v1709_v51 = vpack.c.bf16 %v662_v49, %v661_v48  ;;  %v1132_v48 = vld [vmem:[#allocation7 + $0x70] sm:$0xff]  ;;  %v1133_v49 = vld [vmem:[#allocation7 + $0x78] sm:$0xff] }
  0x73   :  { %1612 = vmatpush1.bf16.msra.mxu0 %v1611_v53  ;;  %v249_v53 = vld [vmem:[#allocation5 + $0x2c0] sm:$0xff] }
  0x74   :  { %1614 = vmatprep.subr.bf16.mxu0 %v1613_v54  ;;  %v1631_v54 = vpack.c.bf16 %v228_v45, %v219_v44  ;;  %v1665_v59 = vpack.c.bf16 %v249_v53, %v240_v52  ;;  %v1682_v44 = vpack.c.bf16 %v178_v41, %v169_v40  ;;  %v205_v52 = vld [vmem:[#allocation5 + $0x160] sm:$0xff]  ;;  %v214_v53 = vld [vmem:[#allocation5 + $0x1a8] sm:$0xff]  ;;  %v1129_v40 = vld [vmem:[#allocation7 + $0x58] sm:$0xff] }
  0x77   :  { %1616 = vmatpush1.bf16.msra.mxu0 %v1615_v60  ;;  %v239_v60 = vld [vmem:[#allocation5 + $0x270] sm:$0xff] }
  0x78   :  { %1650 = vmatprep.subr.bf16.mxu0 %v1649_v4  ;;  %v1635_v4 = vpack.c.bf16 %v246_v57, %v237_v56  ;;  %v1667_v5 = vpack.c.bf16 %v248_v61, %v239_v60  ;;  %v1688_v56 = vpack.c.bf16 %v214_v53, %v205_v52  ;;  %v665_v60 = vld [vmem:[%s2473_s4 + $0x30] sm:$0xff]  ;;  %v666_v61 = vld [vmem:[%s2473_s4 + $0x38] sm:$0xff]  ;;  %v2124_v52 = vld [vmem:[#allocation2] sm:$0xff] }
  0x79   :  { %v1715_v63 = vpack.c.bf16 %v666_v61, %v665_v60  ;;  %v2126_v53 = vld [vmem:[#allocation2 + $0x8] sm:$0xff]  ;;  %v2140_v60 = vld [vmem:[#allocation2 + $0x38] sm:$0xff]  ;;  %v850_v61 = vrot.slane %v2124_v52, 7 }
 0x12d   :  { %v154_v13 = vpop.f32.mrb[0].mxu0 }
 0x12e   :  { %vm158_vm1 = vcmp.gt.f32.partialorder %v154_v13, 0.0  ;;  %v159_v14 = vmul.f32 0.1, %v154_v13  ;;  %v1407_v16 = vpop.f32.mrb[1].mxu0 }
 0x12f   :  { %v285_v16 = vld [vmem:[#allocation5 + $0x3e0] sm:$0xff] }
 0x130   :  { %v2037_v26 = vsel %vm158_vm1, %v154_v13, %v159_v14  ;;  %v283_v13 = vld [vmem:[#allocation5 + $0x3d0] sm:$0xff]  ;;  %v276_v14 = vld [vmem:[#allocation5 + $0x398] sm:$0xff] }
 0x131   :  { %370 = vmatmul.mubr.f32.vlgmr.msra.gmra.mrb[0].mxu1 %v2037_v26  ;;  %441 = vmatmul.mubr.f32.vlgmr.msra.gmra.mrb[2].mxu0 %v2037_v26 }
 0x132   :  { %1620 = vmatpush1.bf16.msra.mxu1 %v1619_v17  ;;  %1652 = vmatpush1.bf16.msra.mxu0 %v1651_v18  ;;  %v1639_v17 = vpack.c.bf16 %v264_v7, %v255_v6  ;;  %v1671_v18 = vpack.c.bf16 %v266_v11, %v257_v10  ;;  %v1694_v6 = vpack.c.bf16 %v250_v3, %v241_v2  ;;  %v669_v10 = vld [vmem:[%s2473_s4 + $0x50] sm:$0xff]  ;;  %v670_v11 = vld [vmem:[%s2473_s4 + $0x58] sm:$0xff]  ;;  %v860_v2 = vrot.slane %v2126_v53, 7 }
 0x133   :  { %1622 = vmatprep.subr.bf16.mxu1 %v1621_v21  ;;  %1654 = vmatprep.subr.bf16.mxu0 %v1653_v22  ;;  %v1641_v21 = vpack.c.bf16 %v283_v13, %v274_v12  ;;  %v1673_v22 = vpack.c.bf16 %v285_v16, %v276_v14  ;;  %v1721_v13 = vpack.c.bf16 %v670_v11, %v669_v10  ;;  %v277_v14 = vld [vmem:[#allocation5 + $0x3a0] sm:$0xff]  ;;  %v286_v16 = vld [vmem:[#allocation5 + $0x3e8] sm:$0xff]  ;;  %v2158_v10 = vld [vmem:[#allocation2 + $0x50] sm:$0xff] }
 0x134   :  { %511 = vmatprep.mubr.f32.mxu1 %v1882_v1  ;;  %582 = vmatprep.mubr.f32.mxu0 %v1882_v1 }
 0x136   :  { %1624 = vmatpush1.bf16.msra.mxu1 %v1623_v30  ;;  %1656 = vmatpush1.bf16.msra.mxu0 %v1655_v31  ;;  %v1643_v30 = vpack.c.bf16 %v282_v20, %v273_v19  ;;  %v1675_v31 = vpack.c.bf16 %v284_v24, %v275_v23  ;;  %v1700_v19 = vpack.c.bf16 %v286_v16, %v277_v14  ;;  %v673_v23 = vld [vmem:[%s2473_s4 + $0x70] sm:$0xff]  ;;  %v674_v24 = vld [vmem:[%s2473_s4 + $0x78] sm:$0xff]  ;;  %v2164_v14 = vld [vmem:[#allocation2 + $0x60] sm:$0xff] }
 0x137   :  { %1626 = vmatprep.subr.bf16.mxu1 %v1625_v34  ;;  %1658 = vmatprep.subr.bf16.mxu0 %v1657_v35  ;;  %v1677_v34 = vpack.c.bf16 %v303_v29, %v294_v28  ;;  %v300_v35 = vld [vmem:[#allocation5 + $0x458] sm:$0xff]  ;;  %v1727_v27 = vpack.c.bf16 %v674_v24, %v673_v23  ;;  %v1118_v28 = vld [vmem:[#allocation7] sm:$0xff]  ;;  %v1119_v29 = vld [vmem:[#allocation7 + $0x8] sm:$0xff] }
 0x138   :  { %v1647_v38 = vpack.c.bf16 %v300_v35, %v291_v32  ;;  %v1121_v32 = vld [vmem:[#allocation7 + $0x18] sm:$0xff]  ;;  %v1123_v35 = vld [vmem:[#allocation7 + $0x28] sm:$0xff] }
 0x139   :  { %v2166_v16 = vld [vmem:[#allocation2 + $0x68] sm:$0xff] }
 0x13a   :  { %1628 = vmatpush1.bf16.msra.mxu1 %v1627_v42  ;;  %1660 = vmatpush1.bf16.msra.mxu0 %v1659_v43  ;;  %v659_v42 = vld [vmem:[%s2473_s4] sm:$0xff]  ;;  %v660_v43 = vld [vmem:[%s2473_s4 + $0x8] sm:$0xff] }
 0x13b   :  { %1630 = vmatprep.subr.bf16.mxu1 %v1629_v46  ;;  %1662 = vmatprep.subr.bf16.mxu0 %v1661_v47  ;;  %v1706_v45 = vpack.c.bf16 %v660_v43, %v659_v42  ;;  %v187_v46 = vld [vmem:[#allocation5 + $0xd0] sm:$0xff]  ;;  %v196_v47 = vld [vmem:[#allocation5 + $0x118] sm:$0xff]  ;;  %v748_v42 = vld [vmem:[%s2474_s5] sm:$0xff] }
 0x13c   :  { %v1685_v50 = vpack.c.bf16 %v196_v47, %v187_v46  ;;  %v749_v43 = vld [vmem:[%s2474_s5 + $0x8] sm:$0xff] }
 0x13d   :  { %v1131_v46 = vld [vmem:[#allocation7 + $0x68] sm:$0xff] }
 0x13e   :  { %1632 = vmatpush1.bf16.msra.mxu1 %v1631_v54  ;;  %1664 = vmatpush1.bf16.msra.mxu0 %v1663_v55  ;;  %v663_v54 = vld [vmem:[%s2473_s4 + $0x20] sm:$0xff]  ;;  %v664_v55 = vld [vmem:[%s2473_s4 + $0x28] sm:$0xff] }
 0x13f   :  { %1634 = vmatprep.subr.bf16.mxu1 %v1633_v58  ;;  %1666 = vmatprep.subr.bf16.mxu0 %v1665_v59  ;;  %v1712_v57 = vpack.c.bf16 %v664_v55, %v663_v54  ;;  %v223_v58 = vld [vmem:[#allocation5 + $0x1f0] sm:$0xff]  ;;  %v232_v59 = vld [vmem:[#allocation5 + $0x238] sm:$0xff] }
 0x140   :  { %v1691_v62 = vpack.c.bf16 %v232_v59, %v223_v58  ;;  %v2128_v54 = vld [vmem:[#allocation2 + $0x10] sm:$0xff]  ;;  %v2130_v55 = vld [vmem:[#allocation2 + $0x18] sm:$0xff]  ;;  %v2136_v58 = vld [vmem:[#allocation2 + $0x28] sm:$0xff] }
 0x141   :  { %2485 = vst [vmem:[#allocation12_spill] sm:$0xff] %v2128_v54  ;;  %v2138_v59 = vld [vmem:[#allocation2 + $0x30] sm:$0xff]  ;;  %v861_v3 = vrot.slane %v2130_v55, 7 }
 0x142   :  { %1636 = vmatpush1.bf16.msra.mxu1 %v1635_v4  ;;  %1668 = vmatpush1.bf16.msra.mxu0 %v1667_v5  ;;  %v667_v4 = vld [vmem:[%s2473_s4 + $0x40] sm:$0xff]  ;;  %v668_v5 = vld [vmem:[%s2473_s4 + $0x48] sm:$0xff]  ;;  %2487 = vst [vmem:[#allocation14_spill] sm:$0xff] %v2138_v59 }
 0x143   :  { %1638 = vmatprep.subr.bf16.mxu1 %v1637_v8  ;;  %1670 = vmatprep.subr.bf16.mxu0 %v1669_v9  ;;  %v1718_v7 = vpack.c.bf16 %v668_v5, %v667_v4  ;;  %v259_v8 = vld [vmem:[#allocation5 + $0x310] sm:$0xff]  ;;  %v268_v9 = vld [vmem:[#allocation5 + $0x358] sm:$0xff]  ;;  %v2147_v4 = vld [vmem:[#allocation2 + $0x40] sm:$0xff] }
 0x144   :  { %v1697_v12 = vpack.c.bf16 %v268_v9, %v259_v8  ;;  %2488 = vst [vmem:[#allocation15_spill] sm:$0xff] %v2147_v4  ;;  %v2149_v5 = vld [vmem:[#allocation2 + $0x48] sm:$0xff]  ;;  %v863_v8 = vrot.slane %v2140_v60, 7  ;;  %v854_v11 = vrot.slane %v2147_v4, 7 }
 0x146   :  { %1640 = vmatpush1.bf16.msra.mxu1 %v1639_v17  ;;  %1672 = vmatpush1.bf16.msra.mxu0 %v1671_v18  ;;  %v671_v17 = vld [vmem:[%s2473_s4 + $0x60] sm:$0xff]  ;;  %v672_v18 = vld [vmem:[%s2473_s4 + $0x68] sm:$0xff] }
 0x147   :  { %1642 = vmatprep.subr.bf16.mxu1 %v1641_v21  ;;  %1674 = vmatprep.subr.bf16.mxu0 %v1673_v22  ;;  %v1724_v20 = vpack.c.bf16 %v672_v18, %v671_v17  ;;  %v295_v21 = vld [vmem:[#allocation5 + $0x430] sm:$0xff]  ;;  %v304_v22 = vld [vmem:[#allocation5 + $0x478] sm:$0xff] }
 0x148   :  { %v1703_v25 = vpack.c.bf16 %v304_v22, %v295_v21  ;;  %v2170_v18 = vld [vmem:[#allocation2 + $0x70] sm:$0xff] }
 0x14a   :  { %1644 = vmatpush1.bf16.msra.mxu1 %v1643_v30  ;;  %1676 = vmatpush1.bf16.msra.mxu0 %v1675_v31  ;;  %v1120_v30 = vld [vmem:[#allocation7 + $0x10] sm:$0xff]  ;;  %v1732_v31 = vpack.c.bf16 %v1119_v29, %v1118_v28  ;;  %v2189_v28 = vld [vmem:[#allocation2 + $0x88] sm:$0xff] }
 0x14b   :  { %1646 = vmatprep.subr.bf16.mxu1 %v1645_v33  ;;  %1678 = vmatprep.subr.bf16.mxu0 %v1677_v34  ;;  %v1736_v33 = vpack.c.bf16 %v1121_v32, %v1120_v30  ;;  %v1122_v34 = vld [vmem:[#allocation7 + $0x20] sm:$0xff] }
 0x14c   :  { %v1740_v36 = vpack.c.bf16 %v1123_v35, %v1122_v34  ;;  %v866_v34 = vrot.slane %v2166_v16, 7 }
 0x14e   :  { %1648 = vmatpush1.bf16.msra.mxu1 %v1647_v38  ;;  %1680 = vmatpush1.bf16.msra.mxu0 %v1679_v39  ;;  %v1127_v38 = vld [vmem:[#allocation7 + $0x48] sm:$0xff]  ;;  %v1128_v39 = vld [vmem:[#allocation7 + $0x50] sm:$0xff] }
 0x14f   :  { %1681 = vmatprep.subr.bf16.mxu1 %v1880_v0  ;;  %1705 = vmatprep.subr.bf16.mxu0 %v1880_v0  ;;  %v1752_v41 = vpack.c.bf16 %v1129_v40, %v1128_v39 }
 0x151   :  { %512 = vmatmul.mubr.f32.vlgmr.msra.gmra.mrb[2].mxu1 %v2037_v26  ;;  %583 = vmatmul.mubr.f32.vlgmr.msra.gmra.mrb[4].mxu0 %v2037_v26 }
 0x152   :  { %1683 = vmatpush3.bf16.msra.mxu1 %v1682_v44  ;;  %1707 = vmatpush3.bf16.msra.mxu0 %v1706_v45  ;;  %v1730_v44 = vpack.c.bf16 %v749_v43, %v748_v42  ;;  %v1130_v45 = vld [vmem:[#allocation7 + $0x60] sm:$0xff] }
 0x153   :  { %1684 = vmatprep.subr.bf16.mxu1 %v1880_v0  ;;  %1708 = vmatprep.subr.bf16.mxu0 %v1880_v0  ;;  %v1756_v47 = vpack.c.bf16 %v1131_v46, %v1130_v45 }
 0x154   :  { %1440 = vmatprep.mubr.msk.f32.mxu1 %vm1881_vm0, %v1882_v1  ;;  %1475 = vmatprep.mubr.msk.f32.mxu0 %vm1881_vm0, %v1882_v1 }
 0x156   :  { %1686 = vmatpush3.bf16.msra.mxu1 %v1685_v50  ;;  %1710 = vmatpush3.bf16.msra.mxu0 %v1709_v51  ;;  %v1760_v50 = vpack.c.bf16 %v1133_v49, %v1132_v48  ;;  %v870_v51 = vlaneseq }
 0x157   :  { %1687 = vmatprep.subr.bf16.mxu1 %v1880_v0  ;;  %1711 = vmatprep.subr.bf16.mxu0 %v1880_v0 }
 0x15a   :  { %1689 = vmatpush3.bf16.msra.mxu1 %v1688_v56  ;;  %1713 = vmatpush3.bf16.msra.mxu0 %v1712_v57  ;;  %v2132_v56 = vld [vmem:[#allocation2 + $0x20] sm:$0xff]  ;;  %v2134_v57 = vshrl.u32 %v870_v51, 7 }
 0x15b   :  { %1690 = vmatprep.subr.bf16.mxu1 %v1880_v0  ;;  %1714 = vmatprep.subr.bf16.mxu0 %v1880_v0  ;;  %2486 = vst [vmem:[#allocation13_spill] sm:$0xff] %v2132_v56 }
 0x15c   :  { %vm872_vm2 = vcmp.lt.s32.totalorder %v2134_v57, 1  ;;  %v2156_v9 = vsub.s32 0, %v2134_v57  ;;  %vm1023_vm3 = vcmp.lt.s32.totalorder %v2134_v57, 7 }
 0x15d   :  { %v873_v17 = vsel %vm872_vm2, %v860_v2, %v850_v61 }
 0x15e   :  { %1692 = vmatpush3.bf16.msra.mxu1 %v1691_v62  ;;  %1716 = vmatpush3.bf16.msra.mxu0 %v1715_v63  ;;  %v851_v62 = vrot.slane %v2128_v54, 7  ;;  %v852_v63 = vrot.slane %v2132_v56, 7  ;;  %2489 = vst [vmem:[#allocation16_spill] sm:$0xff] %v2156_v9 }
 0x15f   :  { %1693 = vmatprep.subr.bf16.mxu1 %v1880_v0  ;;  %1717 = vmatprep.subr.bf16.mxu0 %v1880_v0 }
 0x160   :  { %v874_v22 = vsel %vm872_vm2, %v861_v3, %v851_v62 }
 0x162   :  { %1695 = vmatpush3.bf16.msra.mxu1 %v1694_v6  ;;  %1719 = vmatpush3.bf16.msra.mxu0 %v1718_v7  ;;  %v862_v6 = vrot.slane %v2136_v58, 7  ;;  %v853_v7 = vrot.slane %v2138_v59, 7 }
 0x163   :  { %1696 = vmatprep.subr.bf16.mxu1 %v1880_v0  ;;  %1720 = vmatprep.subr.bf16.mxu0 %v1880_v0 }
 0x164   :  { %v2180_v23 = vsel %vm872_vm2, %v862_v6, %v852_v63  ;;  %v2184_v24 = vsel %vm872_vm2, %v863_v8, %v853_v7 }
 0x166   :  { %1698 = vmatpush3.bf16.msra.mxu1 %v1697_v12  ;;  %1722 = vmatpush3.bf16.msra.mxu0 %v1721_v13  ;;  %v864_v12 = vrot.slane %v2149_v5, 7  ;;  %v2162_v13 = vld [vmem:[#allocation2 + $0x58] sm:$0xff] }
 0x167   :  { %1699 = vmatprep.subr.bf16.mxu1 %v1880_v0  ;;  %1723 = vmatprep.subr.bf16.mxu0 %v1880_v0  ;;  %v865_v32 = vrot.slane %v2162_v13, 7 }
 0x16a   :  { %1701 = vmatpush3.bf16.msra.mxu1 %v1700_v19  ;;  %1725 = vmatpush3.bf16.msra.mxu0 %v1724_v20  ;;  %v2172_v19 = vld [vmem:[#allocation2 + $0x78] sm:$0xff] }
 0x16b   :  { %1702 = vmatprep.subr.bf16.mxu1 %v1880_v0  ;;  %1726 = vmatprep.subr.bf16.mxu0 %v1880_v0 }
 0x16e   :  { %1704 = vmatpush3.bf16.msra.mxu1 %v1703_v25  ;;  %1728 = vmatpush3.bf16.msra.mxu0 %v1727_v27  ;;  %v855_v25 = vrot.slane %v2158_v10, 7  ;;  %v2187_v27 = vld [vmem:[#allocation2 + $0x80] sm:$0xff] }
 0x16f   :  { %1729 = vmatprep.subr.bf16.mxu0 %v1880_v0  ;;  %1733 = vmatprep.subr.bf16.mxu1 %v1732_v31  ;;  %v1124_v0 = vld [vmem:[#allocation7 + $0x30] sm:$0xff] }
 0x170   :  { %v2209_v43 = vsel %vm872_vm2, %v865_v32, %v855_v25  ;;  %v1003_v25 = vrot.slane %v2124_v52, 1  ;;  %v1005_v32 = vrot.slane %v2132_v56, 1 }
 0x171   :  { %1441 = vmatmul.mubr.f32.vlgmr.msra.gmra.mrb[4].mxu1 %v2037_v26  ;;  %1476 = vmatmul.mubr.f32.vlgmr.msra.gmra.mrb[6].mxu0 %v2033_v15  ;;  %v1744_v15 = vpack.c.bf16 %v1125_v37, %v1124_v0  ;;  %v1126_v26 = vld [vmem:[#allocation7 + $0x40] sm:$0xff]  ;;  %v857_v0 = vrot.slane %v2170_v18, 7  ;;  %v867_v37 = vrot.slane %v2172_v19, 7 }
 0x172   :  { %1482 = vmatprep.mubr.msk.f32.mxu0 %vm1881_vm0, %v1882_v1  ;;  %1735 = vmatpush3.bf16.msra.mxu1 %v1732_v31  ;;  %v1748_v1 = vpack.c.bf16 %v1127_v38, %v1126_v26  ;;  %v858_v38 = vrot.slane %v2187_v27, 7 }
 0x173   :  { %1737 = vmatprep.subr.bf16.mxu1 %v1736_v33  ;;  %1731 = vmatpush3.bf16.msra.mxu0 %v1730_v44  ;;  %v2226_v51 = vsel %vm872_vm2, %v867_v37, %v857_v0  ;;  %v2256_v0 = vld [vmem:[#allocation2 + $0x90] sm:$0xff]  ;;  %v1006_v37 = vrot.slane %v2138_v59, 1 }
 0x176   :  { %1739 = vmatpush3.bf16.msra.mxu1 %v1736_v33  ;;  %v856_v33 = vrot.slane %v2164_v14, 7 }
 0x177   :  { %1741 = vmatprep.subr.bf16.mxu1 %v1740_v36 }
 0x178   :  { %v2213_v44 = vsel %vm872_vm2, %v866_v34, %v856_v33  ;;  %v1013_v33 = vrot.slane %v2126_v53, 1  ;;  %v1014_v34 = vrot.slane %v2130_v55, 1  ;;  %v1008_v53 = vrot.slane %v2158_v10, 1 }
 0x179   :  { %v1018_v55 = vrot.slane %v2162_v13, 1 }
 0x17a   :  { %1743 = vmatpush3.bf16.msra.mxu1 %v1740_v36  ;;  %v2198_v36 = vsel %vm872_vm2, %v864_v12, %v854_v11 }
 0x17b   :  { %1745 = vmatprep.subr.bf16.mxu1 %v1744_v15 }
 0x17e   :  { %1747 = vmatpush3.bf16.msra.mxu1 %v1744_v15 }
 0x17f   :  { %1749 = vmatprep.subr.bf16.mxu1 %v1748_v1 }
 0x182   :  { %1751 = vmatpush3.bf16.msra.mxu1 %v1748_v1  ;;  %v868_v1 = vrot.slane %v2189_v28, 7 }
 0x183   :  { %1753 = vmatprep.subr.bf16.mxu1 %v1752_v41 }
 0x184   :  { %v2230_v61 = vsel %vm872_vm2, %v868_v1, %v858_v38  ;;  %v1017_v38 = vrot.slane %v2149_v5, 1  ;;  %v1019_v1 = vrot.slane %v2166_v16, 1  ;;  %v1024_v5 = vsel %vm1023_vm3, %v1003_v25, %v1013_v33 }
 0x186   :  { %1755 = vmatpush3.bf16.msra.mxu1 %v1752_v41 }
 0x187   :  { %1757 = vmatprep.subr.bf16.mxu1 %v1756_v47 }
 0x18a   :  { %1759 = vmatpush3.bf16.msra.mxu1 %v1756_v47 }
 0x18b   :  { %1761 = vmatprep.subr.bf16.mxu1 %v1760_v50 }
 0x18e   :  { %1763 = vmatpush3.bf16.msra.mxu1 %v1760_v50 }
 0x204   :  { %v371_v20 = vpop.f32.mrb[0].mxu1  ;;  %v2174_v21 = vpop.f32.mrb[2].mxu0 }
 0x205   :  { %v886_v29 = vrot.slane %v371_v20, %v2156_v9  ;;  %v373_v30 = vpop.f32.mrb[1].mxu1  ;;  %v444_v31 = vpop.f32.mrb[3].mxu0 }
 0x206   :  { %v906_v35 = vrot.slane %v444_v31, %v2156_v9  ;;  %v1004_v31 = vrot.slane %v2128_v54, 1 }
 0x207   :  { %v887_v15 = vmul.f32 %v886_v29, %v873_v17  ;;  %v888_v26 = vmul.f32 %v886_v29, %v874_v22  ;;  %v889_v41 = vmul.f32 %v886_v29, %v2180_v23  ;;  %v890_v47 = vmul.f32 %v886_v29, %v2184_v24 }
 0x208   :  { %v907_v39 = vmul.f32 %v906_v35, %v874_v22  ;;  %v908_v40 = vmul.f32 %v906_v35, %v2180_v23  ;;  %v909_v42 = vmul.f32 %v906_v35, %v2184_v24  ;;  %v910_v48 = vmul.f32 %v906_v35, %v2198_v36 }
 0x209   :  { %v891_v50 = vmul.f32 %v886_v29, %v2198_v36  ;;  %v911_v63 = vmul.f32 %v906_v35, %v2209_v43  ;;  %v892_v2 = vmul.f32 %v886_v29, %v2209_v43  ;;  %v912_v3 = vmul.f32 %v906_v35, %v2213_v44 }
 0x20a   :  { %v2215_v45 = vadd.f32 %v907_v39, %v887_v15  ;;  %v2217_v46 = vadd.f32 %v908_v40, %v888_v26  ;;  %v2221_v49 = vadd.f32 %v909_v42, %v889_v41  ;;  %v2232_v62 = vadd.f32 %v910_v48, %v890_v47 }
 0x20b   :  { %v2237_v6 = vadd.f32 %v911_v63, %v891_v50  ;;  %v893_v7 = vmul.f32 %v886_v29, %v2213_v44  ;;  %v913_v8 = vmul.f32 %v906_v35, %v2226_v51  ;;  %v914_v11 = vmul.f32 %v906_v35, %v2230_v61 }
 0x20c   :  { %v2242_v12 = vadd.f32 %v912_v3, %v892_v2  ;;  %v894_v17 = vmul.f32 %v886_v29, %v2226_v51  ;;  %v1015_v35 = vrot.slane %v2136_v58, 1  ;;  %v2258_v29 = vld [vmem:[#allocation2 + $0x98] sm:$0xff]  ;;  %v1016_v15 = vrot.slane %v2140_v60, 1 }
 0x20d   :  { %v2245_v20 = vadd.f32 %v913_v8, %v893_v7  ;;  %v1007_v26 = vrot.slane %v2147_v4, 1  ;;  %v1009_v58 = vrot.slane %v2164_v14, 1  ;;  %v2270_v39 = vrot.slane %v2174_v21, %v2156_v9 }
 0x20e   :  { %v2247_v22 = vadd.f32 %v914_v11, %v894_v17  ;;  %v859_v40 = vrot.slane %v2256_v0, 7  ;;  %v869_v60 = vrot.slane %v2258_v29, 7  ;;  %v2275_v41 = vrot.slane %v373_v30, %v2156_v9 }
 0x20f   :  { %v1025_v13 = vsel %vm1023_vm3, %v1004_v31, %v1014_v34  ;;  %v2283_v16 = vsel %vm1023_vm3, %v1005_v32, %v1015_v35  ;;  %v2287_v21 = vsel %vm1023_vm3, %v1006_v37, %v1016_v15  ;;  %v2291_v42 = vsel %vm1023_vm3, %v1007_v26, %v1017_v38 }
 0x210   :  { %2490 = vst [vmem:[#allocation17_spill] sm:$0xff] %v2283_v16  ;;  %v2295_v30 = vsel %vm1023_vm3, %v1008_v53, %v1018_v55  ;;  %v2299_v47 = vsel %vm1023_vm3, %v1009_v58, %v1019_v1  ;;  %v1038_v63 = vmul.f32 %v2270_v39, %v1024_v5  ;;  %v1039_v2 = vmul.f32 %v2270_v39, %v1025_v13 }
 0x211   :  { %v2308_v7 = vsel %vm872_vm2, %v869_v60, %v859_v40  ;;  %v947_v17 = vmul.f32 %v2275_v41, %v2124_v52  ;;  %v948_v25 = vmul.f32 %v2275_v41, %v2128_v54  ;;  %v949_v31 = vmul.f32 %v2275_v41, %v2132_v56 }
 0x212   :  { %v1040_v32 = vmul.f32 %v2270_v39, %v2283_v16  ;;  %v950_v52 = vmul.f32 %v2275_v41, %v2138_v59  ;;  %v1041_v15 = vmul.f32 %v2270_v39, %v2287_v21  ;;  %v951_v53 = vmul.f32 %v2275_v41, %v2147_v4 }
 0x213   :  { %v1042_v55 = vmul.f32 %v2270_v39, %v2291_v42  ;;  %v952_v40 = vmul.f32 %v2275_v41, %v2158_v10  ;;  %v2346_v60 = vmul.f32 %v2270_v39, %v2295_v30 }
 0x224   :  { %v513_v8 = vpop.f32.mrb[2].mxu1  ;;  %v584_v11 = vpop.f32.mrb[4].mxu0 }
 0x225   :  { %v2319_v33 = vrot.slane %v513_v8, %v2156_v9  ;;  %v2322_v34 = vrot.slane %v584_v11, %v2156_v9  ;;  %v515_v35 = vpop.f32.mrb[3].mxu1  ;;  %v586_v37 = vpop.f32.mrb[5].mxu0 }
 0x226   :  { %v2329_v26 = vrot.slane %v515_v35, %v2156_v9  ;;  %v2332_v38 = vrot.slane %v586_v37, %v2156_v9 }
 0x227   :  { %v927_v58 = vmul.f32 %v2322_v34, %v2180_v23  ;;  %v928_v1 = vmul.f32 %v2322_v34, %v2184_v24  ;;  %v967_v5 = vmul.f32 %v2319_v33, %v2128_v54  ;;  %v968_v11 = vmul.f32 %v2319_v33, %v2132_v56 }
 0x228   :  { %v987_v8 = vmul.f32 %v2332_v38, %v2132_v56  ;;  %v953_v23 = vmul.f32 %v2275_v41, %v2164_v14  ;;  %v1058_v35 = vmul.f32 %v2329_v26, %v1025_v13  ;;  %v929_v3 = vmul.f32 %v2322_v34, %v2198_v36 }
 0x229   :  { %v935_v24 = vadd.f32 %v927_v58, %v2215_v45  ;;  %v936_v37 = vadd.f32 %v928_v1, %v2217_v46  ;;  %v988_v48 = vmul.f32 %v2332_v38, %v2138_v59  ;;  %v1059_v50 = vmul.f32 %v2329_v26, %v2283_v16 }
 0x22a   :  { %v969_v54 = vmul.f32 %v2319_v33, %v2138_v59  ;;  %v930_v56 = vmul.f32 %v2322_v34, %v2209_v43  ;;  %v937_v13 = vadd.f32 %v929_v3, %v2221_v49  ;;  %v989_v46 = vmul.f32 %v2332_v38, %v2147_v4 }
 0x22b   :  { %v955_v45 = vadd.f32 %v947_v17, %v935_v24  ;;  %v956_v58 = vadd.f32 %v948_v25, %v936_v37  ;;  %v1060_v36 = vmul.f32 %v2329_v26, %v2287_v21  ;;  %v970_v16 = vmul.f32 %v2319_v33, %v2147_v4 }
 0x22c   :  { %v938_v1 = vadd.f32 %v930_v56, %v2232_v62  ;;  %v931_v59 = vmul.f32 %v2322_v34, %v2213_v44  ;;  %v957_v17 = vadd.f32 %v949_v31, %v937_v13  ;;  %v990_v49 = vmul.f32 %v2332_v38, %v2158_v10 }
 0x22d   :  { %v975_v9 = vadd.f32 %v967_v5, %v955_v45  ;;  %v976_v43 = vadd.f32 %v968_v11, %v956_v58  ;;  %v1061_v25 = vmul.f32 %v2329_v26, %v2291_v42  ;;  %v932_v56 = vmul.f32 %v2322_v34, %v2226_v51 }
 0x22e   :  { %v958_v3 = vadd.f32 %v950_v52, %v938_v1  ;;  %v939_v24 = vadd.f32 %v931_v59, %v2237_v6  ;;  %v977_v4 = vadd.f32 %v969_v54, %v957_v17  ;;  %v971_v44 = vmul.f32 %v2319_v33, %v2158_v10 }
 0x22f   :  { %v995_v62 = vadd.f32 %v987_v8, %v975_v9  ;;  %v996_v37 = vadd.f32 %v988_v48, %v976_v43  ;;  %v991_v11 = vmul.f32 %v2332_v38, %v2164_v14  ;;  %v940_v52 = vadd.f32 %v932_v56, %v2242_v12 }
 0x230   :  { %v978_v5 = vadd.f32 %v970_v16, %v958_v3  ;;  %v959_v31 = vadd.f32 %v951_v53, %v939_v24  ;;  %v997_v13 = vadd.f32 %v989_v46, %v977_v4  ;;  %v972_v59 = vmul.f32 %v2319_v33, %v2164_v14 }
 0x231   :  { %v1046_v45 = vadd.f32 %v1038_v63, %v995_v62  ;;  %v1047_v58 = vadd.f32 %v1039_v2, %v996_v37  ;;  %v960_v6 = vadd.f32 %v952_v40, %v940_v52  ;;  %v933_v54 = vmul.f32 %v2322_v34, %v2230_v61 }
 0x232   :  { %v998_v51 = vadd.f32 %v990_v49, %v978_v5  ;;  %v979_v9 = vadd.f32 %v971_v44, %v959_v31  ;;  %v1048_v53 = vadd.f32 %v1040_v32, %v997_v13  ;;  %v992_v8 = vmul.f32 %v2332_v38, %v2170_v18 }
 0x233   :  { %v1066_v48 = vadd.f32 %v1058_v35, %v1046_v45  ;;  %v1067_v16 = vadd.f32 %v1059_v50, %v1047_v58  ;;  %v980_v63 = vadd.f32 %v972_v59, %v960_v6  ;;  %v941_v4 = vadd.f32 %v933_v54, %v2245_v20 }
 0x234   :  { %v1049_v1 = vadd.f32 %v1041_v15, %v998_v51  ;;  %v999_v12 = vadd.f32 %v991_v11, %v979_v9  ;;  %v1068_v2 = vadd.f32 %v1060_v36, %v1048_v53  ;;  %v1062_v46 = vmul.f32 %v2329_v26, %v2295_v30  ;;  %v2494_v9 = vld [vmem:[#allocation16_spill] sm:$0xff] }
 0x235   :  { %v973_v40 = vmul.f32 %v2319_v33, %v2170_v18  ;;  %v934_v61 = vmul.f32 %v2322_v34, %v2308_v7  ;;  %v1000_v35 = vadd.f32 %v992_v8, %v980_v63  ;;  %v961_v43 = vadd.f32 %v953_v23, %v941_v4 }
 0x236   :  { %v1069_v50 = vadd.f32 %v1061_v25, %v1049_v1  ;;  %v1050_v32 = vadd.f32 %v1042_v55, %v999_v12  ;;  %v1063_v15 = vmul.f32 %v2329_v26, %v2299_v47  ;;  %v1021_v17 = vrot.slane %v2189_v28, 1  ;;  %v2495_v12 = vld [vmem:[#allocation17_spill] sm:$0xff] }
 0x237   :  { %v942_v20 = vadd.f32 %v934_v61, %v2247_v22  ;;  %v954_v36 = vmul.f32 %v2275_v41, %v2170_v18  ;;  %v1051_v3 = vadd.f32 %v2346_v60, %v1000_v35  ;;  %v981_v24 = vadd.f32 %v973_v40, %v961_v43 }
 0x238   :  { %v1070_v49 = vadd.f32 %v1062_v46, %v1050_v32  ;;  %v993_v7 = vmul.f32 %v2332_v38, %v2187_v27  ;;  %v974_v55 = vmul.f32 %v2319_v33, %v2187_v27  ;;  %v2491_v23 = vrot.slane %v2172_v19, 1 }
 0x239   :  { %v962_v34 = vadd.f32 %v954_v36, %v942_v20  ;;  %v2492_v28 = vrot.slane %v2170_v18, 1  ;;  %v1071_v25 = vadd.f32 %v1063_v15, %v1051_v3  ;;  %v1044_v60 = vmul.f32 %v2270_v39, %v2299_v47 }
 0x23a   :  { %v1001_v41 = vadd.f32 %v993_v7, %v981_v24  ;;  %v994_v62 = vmul.f32 %v2332_v38, %v2256_v0  ;;  %v2493_v37 = vrot.slane %v2187_v27, 1  ;;  %v1012_v13 = vrot.slane %v2256_v0, 1 }
 0x23b   :  { %v1031_v22 = vsel %vm1023_vm3, %v2492_v28, %v2491_v23  ;;  %v982_v56 = vadd.f32 %v974_v55, %v962_v34  ;;  %v1022_v38 = vrot.slane %v2258_v29, 1 }
 0x23c   :  { %v1032_v33 = vsel %vm1023_vm3, %v2493_v37, %v1021_v17  ;;  %v1052_v19 = vadd.f32 %v1044_v60, %v1001_v41  ;;  %v1064_v44 = vmul.f32 %v2329_v26, %v1031_v22  ;;  %v1045_v31 = vmul.f32 %v2270_v39, %v1031_v22 }
 0x23d   :  { %v1002_v5 = vadd.f32 %v994_v62, %v982_v56  ;;  %v1065_v45 = vmul.f32 %v2329_v26, %v1032_v33  ;;  %v1033_v39 = vsel %vm1023_vm3, %v1012_v13, %v1022_v38 }
 0x23e   :  { %v1072_v11 = vadd.f32 %v1064_v44, %v1052_v19 }
 0x23f   :  { %v1053_v52 = vadd.f32 %v1045_v31, %v1002_v5 }
 0x241   :  { %v1073_v58 = vadd.f32 %v1065_v45, %v1053_v52  ;;  %v1294_v52 = vld [vmem:[%s2476_s7] ss:$0 sm:$0xff]  ;;  %s1883_s7 = smov [#allocation8]  }
 0x242   :  { %s1279_s19 = sshll.u32 %s1883_s7, 4  ;;  %s1280_s19 = int_to_ptr.vmem [resolvable:$true] %s1279_s19 }
 0x243   :  { %s1845_s1 = scalar_lea.vmem %s1280_s19, 1024  ;;  %p1850_p11 = scmp.lt.s32.totalorder %s1280_s19, %s1280_s19 }
 0x244   :  { %v655_v59 = vpop.f32.mrb[4].mxu1  ;;  %v741_v51 = vpop.f32.mrb[6].mxu0  ;;  %p1846_p10 = scmp.ne.s32.totalorder %s1280_s19, %s1845_s1  ;;  %p1851_p12 = scmp.lt.s32.totalorder %s1845_s1, %s1845_s1 }
 0x245   :  { %v1077_v6 = vrot.slane %v655_v59, %v2494_v9  ;;  %vm745_vm4 = vcmp.gt.f32.partialorder %v741_v51, 0.0  ;;  %v746_v54 = vmul.f32 0.1, %v741_v51  ;;  %v1442_v53 = vpop.f32.mrb[5].mxu1  ;;  %v1477_v8 = vpop.f32.mrb[7].mxu0 }
 0x246   :  { %p1852_p13 = por %p1851_p12, %p1850_p11 }
 0x247   :  { %v747_v1 = vsel %vm745_vm4, %v741_v51, %v746_v54  ;;  %v1078_v26 = vmul.f32 %v1077_v6, %v2495_v12  ;;  %v1079_v63 = vmul.f32 %v1077_v6, %v2287_v21  ;;  %v1080_v0 = vmul.f32 %v1077_v6, %v2291_v42  ;;  %v2497_v12 = vld [vmem:[#allocation12_spill] sm:$0xff] }
 0x248   :  { %1483 = vmatmul.mubr.msk.f32.vlgmr.msra.gmra.mrb[8].mxu0 %vm750_vm5, %v747_v1  ;;  %v1081_v29 = vmul.f32 %v1077_v6, %v2295_v30  ;;  %v1082_v4 = vmul.f32 %v1077_v6, %v2299_v47  ;;  %v1083_v46 = vmul.f32 %v1077_v6, %v1031_v22  ;;  %v1084_v40 = vmul.f32 %v1077_v6, %v1032_v33  ;;  %p1853_p0 = pnand %p1852_p13, %p1846_p10 }
 0x249   :  { %v1086_v61 = vadd.f32 %v1078_v26, %v1066_v48  ;;  %v1087_v32 = vadd.f32 %v1079_v63, %v1067_v16  ;;  %v1088_v35 = vadd.f32 %v1080_v0, %v1068_v2  ;;  %v1085_v43 = vmul.f32 %v1077_v6, %v1033_v39  ;;  %v2496_v39 = vld [vmem:[#allocation13_spill] sm:$0xff]  ;;  %v2498_v63 = vld [vmem:[#allocation15_spill] sm:$0xff] }
 0x24a   :  { %v1089_v57 = vadd.f32 %v1081_v29, %v1069_v50  ;;  %v1090_v15 = vadd.f32 %v1082_v4, %v1070_v49  ;;  %v1091_v17 = vadd.f32 %v1083_v46, %v1071_v25  ;;  %v1092_v20 = vadd.f32 %v1084_v40, %v1072_v11  ;;  %v2499_v29 = vld [vmem:[#allocation14_spill] sm:$0xff] }
 0x24b   :  { %vm1094_vm6 = vcmp.gt.f32.partialorder %v1086_v61, 0.0  ;;  %v1102_v36 = vmul.f32 0.1, %v1086_v61  ;;  %vm1095_vm7 = vcmp.gt.f32.partialorder %v1087_v32, 0.0  ;;  %v1103_v21 = vmul.f32 0.1, %v1087_v32 }
 0x24c   :  { %vm1096_vm8 = vcmp.gt.f32.partialorder %v1088_v35, 0.0  ;;  %v1104_v42 = vmul.f32 0.1, %v1088_v35  ;;  %v1105_v47 = vmul.f32 0.1, %v1089_v57  ;;  %vm1097_vm9 = vcmp.gt.f32.partialorder %v1089_v57, 0.0 }
 0x24d   :  { %v1110_v3 = vsel %vm1094_vm6, %v1086_v61, %v1102_v36  ;;  %v1111_v30 = vsel %vm1095_vm7, %v1087_v32, %v1103_v21  ;;  %v1106_v48 = vmul.f32 0.1, %v1090_v15  ;;  %v1093_v16 = vadd.f32 %v1085_v43, %v1073_v58 }
 0x24e   :  { %1517 = vmatprep.mubr.f32.mxu1 %v1110_v3  ;;  %v1112_v24 = vsel %vm1096_vm8, %v1088_v35, %v1104_v42  ;;  %vm1098_vm10 = vcmp.gt.f32.partialorder %v1090_v15, 0.0  ;;  %v1113_v2 = vsel %vm1097_vm9, %v1089_v57, %v1105_v47  ;;  %v1107_v50 = vmul.f32 0.1, %v1091_v17 }
 0x24f   :  { %1518 = vmatmul.mubr.f32.vlgmr.msra.gmra.mrb[6].mxu1 %v1111_v30  ;;  %v1114_v49 = vsel %vm1098_vm10, %v1090_v15, %v1106_v48  ;;  %vm1099_vm11 = vcmp.gt.f32.partialorder %v1091_v17, 0.0  ;;  %v1108_v7 = vmul.f32 0.1, %v1092_v20  ;;  %vm1100_vm12 = vcmp.gt.f32.partialorder %v1092_v20, 0.0 }
 0x250   :  { %1520 = vmatprep.mubr.f32.mxu1 %v1112_v24  ;;  %v1115_v34 = vsel %vm1099_vm11, %v1091_v17, %v1107_v50  ;;  %v1109_v55 = vmul.f32 0.1, %v1093_v16  ;;  %vm1101_vm13 = vcmp.gt.f32.partialorder %v1093_v16, 0.0 }
 0x251   :  { %v1116_v23 = vsel %vm1100_vm12, %v1092_v20, %v1108_v7 }
 0x252   :  { %v1117_v28 = vsel %vm1101_vm13, %v1093_v16, %v1109_v55 }
 0x253   :  { %1521 = vmatmul.mubr.f32.gmra.mrb[8].mxu1 %v1113_v2 }
 0x254   :  { %1523 = vmatprep.mubr.f32.mxu1 %v1114_v49 }
 0x257   :  { %1524 = vmatmul.mubr.f32.gmra.mrb[10].mxu1 %v1115_v34 }
 0x258   :  { %1526 = vmatprep.mubr.f32.mxu1 %v1116_v23 }
 0x25b   :  { %1527 = vmatmul.mubr.f32.gmra.mrb[12].mxu1 %v1117_v28 }
 0x31b   :  { %v820_v22 = vpop.f32.mrb[8].mxu0 }
 0x31c   :  { %v1293_v25 = vmul.f32 -1.442695, %v820_v22  ;;  %v1484_v41 = vpop.f32.mrb[9].mxu0 }
 0x31e   :  { %1775 = vpow2.f32 %v1293_v25 }
 0x322   :  { %v1519_v60 = vpop.f32.mrb[6].mxu1 }
 0x323   :  { %v1207_v56 = vpop.f32.mrb[7].mxu1  ;;  %v1213_v58 = vadd.f32 %v1519_v60, %v1294_v52 }
 0x324   :  { %v1208_v38 = vadd.f32 %v1294_v52, %v1207_v56 }
 0x326   :  { %v1522_v62 = vpop.f32.mrb[8].mxu1 }
 0x327   :  { %v1217_v37 = vpop.f32.mrb[9].mxu1  ;;  %v1223_v59 = vadd.f32 %v1522_v62, %v1294_v52 }
 0x328   :  { %v1776_v33 = vpop.eup %1775  ;;  %v1218_v51 = vadd.f32 %v1294_v52, %v1217_v37 }
 0x329   :  { %v827_v19 = vadd.f32 1.0, %v1776_v33 }
 0x32a   :  { %v1525_v44 = vpop.f32.mrb[10].mxu1 }
 0x32b   :  { %1777 = vrcp.f32 %v827_v19  ;;  %v1227_v5 = vpop.f32.mrb[11].mxu1  ;;  %v1233_v6 = vadd.f32 %v1525_v44, %v1294_v52 }
 0x32c   :  { %v1228_v54 = vadd.f32 %v1294_v52, %v1227_v5 }
 0x32e   :  { %v1528_v31 = vpop.f32.mrb[12].mxu1 }
 0x32f   :  { %v1237_v11 = vpop.f32.mrb[13].mxu1  ;;  %v1243_v53 = vadd.f32 %v1528_v31, %v1294_v52 }
 0x330   :  { %v1238_v8 = vadd.f32 %v1294_v52, %v1237_v11 }
 0x335   :  { %v1778_v45 = vpop.eup %1777 }
 0x336   :  { %v1249_v13 = vrot.slane %v1778_v45, %v2494_v9 }
 0x338   :  { %v1251_v1 = vmul.f32 %v1249_v13, %v2496_v39  ;;  %v1250_v26 = vmul.f32 %v1249_v13, %v2497_v12  ;;  %v1253_v0 = vmul.f32 %v1249_v13, %v2498_v63  ;;  %v1252_v4 = vmul.f32 %v1249_v13, %v2499_v29 }
 0x339   :  { %v1255_v46 = vmul.f32 %v1249_v13, %v2164_v14  ;;  %v1254_v9 = vmul.f32 %v1249_v13, %v2158_v10  ;;  %v1257_v40 = vmul.f32 %v1249_v13, %v2187_v27  ;;  %v1256_v61 = vmul.f32 %v1249_v13, %v2170_v18 }
 0x33a   :  { %v1259_v32 = vadd.f32 %v1251_v1, %v1213_v58  ;;  %v1258_v35 = vadd.f32 %v1250_v26, %v1208_v38  ;;  %v1261_v43 = vadd.f32 %v1253_v0, %v1223_v59  ;;  %v1260_v57 = vadd.f32 %v1252_v4, %v1218_v51 }
 0x33b   :  { %v1263_v15 = vadd.f32 %v1255_v46, %v1233_v6  ;;  %v1262_v17 = vadd.f32 %v1254_v9, %v1228_v54  ;;  %v1265_v20 = vadd.f32 %v1257_v40, %v1243_v53  ;;  %v1264_v36 = vadd.f32 %v1256_v61, %v1238_v8 }
 0x33c   :  { %1267 = vst [vmem:[#allocation8 + $0x8] sm:$0xff] %v1259_v32  ;;  %1266 = vst [vmem:[#allocation8] sm:$0xff] %v1258_v35 }
 0x33d   :  { %1269 = vst [vmem:[#allocation8 + $0x18] sm:$0xff] %v1261_v43  ;;  %1268 = vst [vmem:[#allocation8 + $0x10] sm:$0xff] %v1260_v57 }
 0x33e   :  { %1271 = vst [vmem:[#allocation8 + $0x28] sm:$0xff] %v1263_v15  ;;  %1270 = vst [vmem:[#allocation8 + $0x20] sm:$0xff] %v1262_v17 }
 0x33f   :  { %1273 = vst [vmem:[#allocation8 + $0x38] sm:$0xff] %v1265_v20  ;;  %1272 = vst [vmem:[#allocation8 + $0x30] sm:$0xff] %v1264_v36 }
 0x340   :  { %1856 = shalt.err (!%p1853_p0)
}
 0x341   :  { %s1857_s22 = scalar_lea.hbm %s2477_s8, 1024 }
 0x342   :  { %p1858_p1 = scmp.ne.s32.totalorder %s2477_s8, %s1857_s22  ;;  %p1861_p2 = scmp.lt.u32.totalorder %s1857_s22, %s2477_s8 }
 0x344   :  { %p1863_p3 = pnand %p1861_p2, %p1858_p1 }
 0x346   :  { %1866 = shalt.err (!%p1863_p3)
}
 0x347   :  { %1285 = dma.vmem_to_hbm [thread:$0]  %s1280_s19, 1024, %s2477_s8, [#allocation4], %s1877_s3, %s1877_s3, %s1878_s28  }
 0x348   :  { %1871 = dma.done.wait [#allocation4], 1024  }
 0x349   :  { %1872 = vsyncadd [#allocation4], 4294966272 }
 0x34a   :  { %1289 = vsyncpa [#allocation3], 1 }
 0x34b   :  { %1290 = vsyncpa [#allocation6], 1 }
 0x34c   :  { %1291 = vsyncpa [#allocation4], 1 }

</bundles_post_ra>
